<compile_context>
chip_gen: v7x
topology: tpu7x:2x2x1
jax: 0.10.0
libtpu: 0.0.40
codegen_flags: <defaults>
</compile_context>

<pallas_src>
import functools

import jax
import jax.numpy as jnp
from jax.experimental import pallas as pl
from jax.experimental.pallas import tpu as pltpu

NEG_SLOPE = 0.01   # torch.nn.LeakyReLU default
BN_EPS = 1e-5      # torch.nn.BatchNorm1d default
LANE = 128


def _round_up(x, m):
    return (x + m - 1) // m * m


def _bnet_kernel(x_ref, *refs, compute_dtype):
    """Fused 5-layer MLP (BN pre-folded) on one (batch_tile, C) activation slab."""
    w_refs = refs[0:5]     # per-layer padded weights, each (K_pad, N_pad)
    b_refs = refs[5:10]    # per-layer padded biases, each (1, N_pad), f32
    o_ref = refs[10]

    h = x_ref[...]
    for li in range(5):
        z = jnp.dot(h.astype(compute_dtype), w_refs[li][...],
                    preferred_element_type=jnp.float32)
        z = z + b_refs[li][...]
        # LeakyReLU == max(z, slope*z) for slope in (0,1); last layer is Linear only.
        h = jnp.maximum(z, NEG_SLOPE * z) if li < 4 else z
    o_ref[...] = h.astype(o_ref.dtype)


def fold_bnet_params(params, *, compute_dtype=jnp.bfloat16, lane=LANE):
    """Fold eval-mode BN into the *next* Linear and zero-pad each layer's width
    independently to a lane-dense multiple of `lane`.

    For layer li < 4:  h = leaky(z) * scale + shift, so the following Linear
        h @ W + b == leaky(z) @ (scale.T * W) + (shift @ W + b)
    which is exact for any sign of the folded BN scale (no positivity needed).
    """
    ws = params["weights"]       # 5 x (d_in, d_out)
    bs = params["biases"]        # 5 x (1, d_out)
    scales = params["bn_scale"]  # 4 x (1, d)  = gamma / sqrt(var + eps)
    shifts = params["bn_shift"]  # 4 x (1, d)  = beta - mean * scale

    fw = [ws[0].astype(jnp.float32)]
    fb = [bs[0].astype(jnp.float32)]
    for li in range(1, 5):
        w = ws[li].astype(jnp.float32)
        b = bs[li].astype(jnp.float32)
        s = scales[li - 1].astype(jnp.float32)      # (1, d_in of this layer)
        t = shifts[li - 1].astype(jnp.float32)
        fw.append(s.reshape(-1, 1) * w)             # scale rows of next weight
        fb.append(b + t @ w)                        # carry shift into next bias

    in_dim = fw[0].shape[0]
    out_dim = fw[4].shape[1]
    # Per-layer padded widths (pyramid preserved; only final lane-dense rounding).
    dims = [in_dim] + [w.shape[1] for w in fw]
    pads = [in_dim] + [_round_up(d, lane) for d in dims[1:]]

    def pad2(a, rows, cols):
        return jnp.pad(a, ((0, rows - a.shape[0]), (0, cols - a.shape[1])))

    w_pad = [pad2(fw[li], pads[li], pads[li + 1]).astype(compute_dtype)
             for li in range(5)]
    b_pad = [pad2(fb[li], 1, pads[li + 1]).astype(jnp.float32)
             for li in range(5)]

    return {"w": w_pad, "b": b_pad, "pads": pads,
            "in_dim": in_dim, "out_dim": out_dim,
            "compute_dtype": compute_dtype}


def bnet_forward(x, folded, *, batch_tile=None):
    """x: (N, in_channels) float32.  folded: output of fold_bnet_params."""
    N, C = x.shape
    assert C == folded["in_dim"]
    pads = folded["pads"]
    out_dim = folded["out_dim"]
    out_pad = pads[-1]
    w_pad, b_pad = folded["w"], folded["b"]

    if batch_tile is None:
        if N <= 512:
            # One grid step covering the whole batch: per-step overhead (~0.35us)
            # dominates small tiles, and a single step avoids pipeline restarts.
            batch_tile = _round_up(max(N, 8), 8)
        else:
            # Big tiles (cap 1024 rows) with >= 2 grid steps so a megacore part
            # can shard the "parallel" batch axis across its TensorCores.
            batch_tile = min(1024, _round_up(pl.cdiv(N, 2), LANE))
    batch_tile = max(8, _round_up(batch_tile, 8))

    N_pad = _round_up(N, batch_tile)
    if N_pad != N:
        x = jnp.pad(x, ((0, N_pad - N), (0, 0)))
    grid = (N_pad // batch_tile,)

    kernel = functools.partial(_bnet_kernel,
                               compute_dtype=folded["compute_dtype"])

    # Roofline bookkeeping for the scheduler.
    flops = 2 * N_pad * sum(pads[i] * pads[i + 1] for i in range(5))
    param_bytes = (sum(w.size * w.dtype.itemsize for w in w_pad)
                   + sum(b.size * b.dtype.itemsize for b in b_pad))
    bytes_accessed = (N_pad * C * 4            # input rows (f32)
                      + N_pad * out_pad * 4    # output slab (f32)
                      + param_bytes)

    # VMEM budget: resident params (double-buffered by the pipeline), in/out
    # tiles (double-buffered) and a few f32 intermediate slabs.  Only raise the
    # scoped limit when needed; clamp to the smallest per-core VMEM (v7x 64MiB).
    tile_bytes = batch_tile * (C + out_pad) * 4
    interm_bytes = 4 * batch_tile * max(pads) * 4
    vmem_needed = int(1.5 * (2 * param_bytes + 2 * tile_bytes + interm_bytes))
    cp_kwargs = dict(dimension_semantics=("parallel",))
    if vmem_needed > (16 << 20):
        cp_kwargs["vmem_limit_bytes"] = min(vmem_needed, 64 << 20)

    in_specs = [pl.BlockSpec((batch_tile, C), lambda i: (i, 0))]
    in_specs += [pl.BlockSpec(w.shape, lambda i: (0, 0)) for w in w_pad]   # resident
    in_specs += [pl.BlockSpec(b.shape, lambda i: (0, 0)) for b in b_pad]   # resident

    out = pl.pallas_call(
        kernel,
        out_shape=jax.ShapeDtypeStruct((N_pad, out_pad), jnp.float32),
        grid_spec=pltpu.PrefetchScalarGridSpec(
            num_scalar_prefetch=0,
            grid=grid,
            in_specs=in_specs,
            out_specs=pl.BlockSpec((batch_tile, out_pad), lambda i: (i, 0)),
        ),
        compiler_params=pltpu.CompilerParams(**cp_kwargs),
        cost_estimate=pl.CostEstimate(
            flops=flops, transcendentals=0, bytes_accessed=bytes_accessed),
    )(x, *w_pad, *b_pad)

    # drop batch padding and the zero-padded output lanes
    return out[:N, :out_dim]


def init_bnet_params(key, in_channels, out_channels):
    """Init matching the PyTorch module widths: in -> 8oc -> 6oc -> 4oc -> 2oc -> oc.
    BN running stats / affine params are randomized so the fold is actually tested."""
    dims = [in_channels, 8 * out_channels, 6 * out_channels,
            4 * out_channels, 2 * out_channels, out_channels]

    weights, biases, bn_scale, bn_shift = [], [], [], []
    for li in range(5):
        d_in, d_out = dims[li], dims[li + 1]
        key, kw, kb, k1, k2, k3, k4 = jax.random.split(key, 7)
        bound = 1.0 / jnp.sqrt(jnp.float32(d_in))
        weights.append(jax.random.uniform(kw, (d_in, d_out), jnp.float32, -bound, bound))
        biases.append(jax.random.uniform(kb, (1, d_out), jnp.float32, -bound, bound))
        if li < 4:
            gamma = jax.random.uniform(k1, (1, d_out), jnp.float32, 0.5, 1.5)
            beta = 0.1 * jax.random.normal(k2, (1, d_out), jnp.float32)
            running_mean = 0.1 * jax.random.normal(k3, (1, d_out), jnp.float32)
            running_var = jax.random.uniform(k4, (1, d_out), jnp.float32, 0.5, 1.5)
            scale = gamma / jnp.sqrt(running_var + BN_EPS)
            bn_scale.append(scale)
            bn_shift.append(beta - running_mean * scale)

    return {"weights": weights, "biases": biases,
            "bn_scale": bn_scale, "bn_shift": bn_shift}


def bnet_reference(x, params):
    """Pure-JAX f32 reference (unfused, eval semantics: BN with running stats,
    Dropout = identity)."""
    h = x
    for li in range(4):
        h = h @ params["weights"][li] + params["biases"][li]
        h = jnp.where(h > 0, h, NEG_SLOPE * h)
        h = h * params["bn_scale"][li] + params["bn_shift"][li]
    return h @ params["weights"][4] + params["biases"][4]


if __name__ == "__main__":
    in_channels = 32
    out_channels = 16
    batch = 256

    key = jax.random.PRNGKey(0)
    key, kx = jax.random.split(key)
    x = jax.random.normal(kx, (batch, in_channels), jnp.float32)

    params = init_bnet_params(key, in_channels, out_channels)
    ref = jax.block_until_ready(bnet_reference(x, params))

    # fast path: bf16 MXU operands, f32 accumulation
    folded_bf16 = fold_bnet_params(params, compute_dtype=jnp.bfloat16)
    out = jax.block_until_ready(bnet_forward(x, folded_bf16))
    assert out.shape == (batch, out_channels)
    assert jnp.allclose(out, ref, atol=5e-2, rtol=5e-2), "bf16 path mismatch vs reference"

    # f32 operand path to sanity-check the fold / per-layer padding / packing
    folded_f32 = fold_bnet_params(params, compute_dtype=jnp.float32)
    out_f32 = jax.block_until_ready(bnet_forward(x, folded_f32))
    assert jnp.allclose(out_f32, ref, atol=5e-2, rtol=5e-2), "f32 path mismatch vs reference"

    print("KERNEL_OK")
</pallas_src>

<mosaic_0001>
module attributes {stable_mosaic.version = 11 : i64} {
  func.func @_bnet_kernel(%arg0: i32, %arg1: memref<256x32xf32, #tpu.memory_space<vmem>>, %arg2: memref<32x128xbf16, #tpu.memory_space<vmem>>, %arg3: memref<128x128xbf16, #tpu.memory_space<vmem>>, %arg4: memref<128x128xbf16, #tpu.memory_space<vmem>>, %arg5: memref<128x128xbf16, #tpu.memory_space<vmem>>, %arg6: memref<128x128xbf16, #tpu.memory_space<vmem>>, %arg7: memref<1x128xf32, #tpu.memory_space<vmem>>, %arg8: memref<1x128xf32, #tpu.memory_space<vmem>>, %arg9: memref<1x128xf32, #tpu.memory_space<vmem>>, %arg10: memref<1x128xf32, #tpu.memory_space<vmem>>, %arg11: memref<1x128xf32, #tpu.memory_space<vmem>>, %arg12: memref<256x128xf32, #tpu.memory_space<vmem>>) attributes {dimension_semantics = [#tpu.dimension_semantics<parallel>], iteration_bounds = array<i64: 1>, scalar_prefetch = 0 : i64, scratch_operands = 0 : i64, tpu.core_type = #tpu.core_type<tc>, window_params = [{transform_indices = @transform_0, window_bounds = array<i64: 256, 32>}, {pipeline_mode = #tpu.pipeline_mode<synchronous>, transform_indices = @transform_1, window_bounds = array<i64: 32, 128>}, {pipeline_mode = #tpu.pipeline_mode<synchronous>, transform_indices = @transform_2, window_bounds = array<i64: 128, 128>}, {pipeline_mode = #tpu.pipeline_mode<synchronous>, transform_indices = @transform_3, window_bounds = array<i64: 128, 128>}, {pipeline_mode = #tpu.pipeline_mode<synchronous>, transform_indices = @transform_4, window_bounds = array<i64: 128, 128>}, {pipeline_mode = #tpu.pipeline_mode<synchronous>, transform_indices = @transform_5, window_bounds = array<i64: 128, 128>}, {pipeline_mode = #tpu.pipeline_mode<synchronous>, transform_indices = @transform_6, window_bounds = array<i64: 1, 128>}, {pipeline_mode = #tpu.pipeline_mode<synchronous>, transform_indices = @transform_7, window_bounds = array<i64: 1, 128>}, {pipeline_mode = #tpu.pipeline_mode<synchronous>, transform_indices = @transform_8, window_bounds = array<i64: 1, 128>}, {pipeline_mode = #tpu.pipeline_mode<synchronous>, transform_indices = @transform_9, window_bounds = array<i64: 1, 128>}, {pipeline_mode = #tpu.pipeline_mode<synchronous>, transform_indices = @transform_10, window_bounds = array<i64: 1, 128>}, {transform_indices = @transform_11, window_bounds = array<i64: 256, 128>}]} {
    %c0 = arith.constant 0 : index
    %c0_0 = arith.constant 0 : index
    %0 = vector.load %arg1[%c0, %c0_0] : memref<256x32xf32, #tpu.memory_space<vmem>>, vector<256x32xf32>
    %1 = arith.truncf %0 : vector<256x32xf32> to vector<256x32xbf16>
    %c0_1 = arith.constant 0 : index
    %c0_2 = arith.constant 0 : index
    %2 = vector.load %arg2[%c0_1, %c0_2] : memref<32x128xbf16, #tpu.memory_space<vmem>>, vector<32x128xbf16>
    %cst = arith.constant dense<0.000000e+00> : vector<256x128xf32>
    %3 = tpu.matmul %1, %2, %cst {dimension_numbers = #tpu.dot_dimension_numbers<[1], [0], [0], [1], [0, 0, 1, 1], [], []>} : vector<256x32xbf16>, vector<32x128xbf16>, vector<256x128xf32> -> vector<256x128xf32>
    %c0_3 = arith.constant 0 : index
    %c0_4 = arith.constant 0 : index
    %4 = vector.load %arg7[%c0_3, %c0_4] : memref<1x128xf32, #tpu.memory_space<vmem>>, vector<1x128xf32>
    %5 = vector.broadcast %4 : vector<1x128xf32> to vector<256x128xf32>
    %6 = arith.addf %3, %5 : vector<256x128xf32>
    %cst_5 = arith.constant 0.00999999977 : f32
    %7 = vector.broadcast %cst_5 : f32 to vector<256x128xf32>
    %8 = arith.mulf %7, %6 : vector<256x128xf32>
    %9 = arith.maximumf %6, %8 : vector<256x128xf32>
    %10 = arith.truncf %9 : vector<256x128xf32> to vector<256x128xbf16>
    %c0_6 = arith.constant 0 : index
    %c0_7 = arith.constant 0 : index
    %11 = vector.load %arg3[%c0_6, %c0_7] : memref<128x128xbf16, #tpu.memory_space<vmem>>, vector<128x128xbf16>
    %cst_8 = arith.constant dense<0.000000e+00> : vector<256x128xf32>
    %12 = tpu.matmul %10, %11, %cst_8 {dimension_numbers = #tpu.dot_dimension_numbers<[1], [0], [0], [1], [0, 0, 1, 1], [], []>} : vector<256x128xbf16>, vector<128x128xbf16>, vector<256x128xf32> -> vector<256x128xf32>
    %c0_9 = arith.constant 0 : index
    %c0_10 = arith.constant 0 : index
    %13 = vector.load %arg8[%c0_9, %c0_10] : memref<1x128xf32, #tpu.memory_space<vmem>>, vector<1x128xf32>
    %14 = vector.broadcast %13 : vector<1x128xf32> to vector<256x128xf32>
    %15 = arith.addf %12, %14 : vector<256x128xf32>
    %cst_11 = arith.constant 0.00999999977 : f32
    %16 = vector.broadcast %cst_11 : f32 to vector<256x128xf32>
    %17 = arith.mulf %16, %15 : vector<256x128xf32>
    %18 = arith.maximumf %15, %17 : vector<256x128xf32>
    %19 = arith.truncf %18 : vector<256x128xf32> to vector<256x128xbf16>
    %c0_12 = arith.constant 0 : index
    %c0_13 = arith.constant 0 : index
    %20 = vector.load %arg4[%c0_12, %c0_13] : memref<128x128xbf16, #tpu.memory_space<vmem>>, vector<128x128xbf16>
    %cst_14 = arith.constant dense<0.000000e+00> : vector<256x128xf32>
    %21 = tpu.matmul %19, %20, %cst_14 {dimension_numbers = #tpu.dot_dimension_numbers<[1], [0], [0], [1], [0, 0, 1, 1], [], []>} : vector<256x128xbf16>, vector<128x128xbf16>, vector<256x128xf32> -> vector<256x128xf32>
    %c0_15 = arith.constant 0 : index
    %c0_16 = arith.constant 0 : index
    %22 = vector.load %arg9[%c0_15, %c0_16] : memref<1x128xf32, #tpu.memory_space<vmem>>, vector<1x128xf32>
    %23 = vector.broadcast %22 : vector<1x128xf32> to vector<256x128xf32>
    %24 = arith.addf %21, %23 : vector<256x128xf32>
    %cst_17 = arith.constant 0.00999999977 : f32
    %25 = vector.broadcast %cst_17 : f32 to vector<256x128xf32>
    %26 = arith.mulf %25, %24 : vector<256x128xf32>
    %27 = arith.maximumf %24, %26 : vector<256x128xf32>
    %28 = arith.truncf %27 : vector<256x128xf32> to vector<256x128xbf16>
    %c0_18 = arith.constant 0 : index
    %c0_19 = arith.constant 0 : index
    %29 = vector.load %arg5[%c0_18, %c0_19] : memref<128x128xbf16, #tpu.memory_space<vmem>>, vector<128x128xbf16>
    %cst_20 = arith.constant dense<0.000000e+00> : vector<256x128xf32>
    %30 = tpu.matmul %28, %29, %cst_20 {dimension_numbers = #tpu.dot_dimension_numbers<[1], [0], [0], [1], [0, 0, 1, 1], [], []>} : vector<256x128xbf16>, vector<128x128xbf16>, vector<256x128xf32> -> vector<256x128xf32>
    %c0_21 = arith.constant 0 : index
    %c0_22 = arith.constant 0 : index
    %31 = vector.load %arg10[%c0_21, %c0_22] : memref<1x128xf32, #tpu.memory_space<vmem>>, vector<1x128xf32>
    %32 = vector.broadcast %31 : vector<1x128xf32> to vector<256x128xf32>
    %33 = arith.addf %30, %32 : vector<256x128xf32>
    %cst_23 = arith.constant 0.00999999977 : f32
    %34 = vector.broadcast %cst_23 : f32 to vector<256x128xf32>
    %35 = arith.mulf %34, %33 : vector<256x128xf32>
    %36 = arith.maximumf %33, %35 : vector<256x128xf32>
    %37 = arith.truncf %36 : vector<256x128xf32> to vector<256x128xbf16>
    %c0_24 = arith.constant 0 : index
    %c0_25 = arith.constant 0 : index
    %38 = vector.load %arg6[%c0_24, %c0_25] : memref<128x128xbf16, #tpu.memory_space<vmem>>, vector<128x128xbf16>
    %cst_26 = arith.constant dense<0.000000e+00> : vector<256x128xf32>
    %39 = tpu.matmul %37, %38, %cst_26 {dimension_numbers = #tpu.dot_dimension_numbers<[1], [0], [0], [1], [0, 0, 1, 1], [], []>} : vector<256x128xbf16>, vector<128x128xbf16>, vector<256x128xf32> -> vector<256x128xf32>
    %c0_27 = arith.constant 0 : index
    %c0_28 = arith.constant 0 : index
    %40 = vector.load %arg11[%c0_27, %c0_28] : memref<1x128xf32, #tpu.memory_space<vmem>>, vector<1x128xf32>
    %41 = vector.broadcast %40 : vector<1x128xf32> to vector<256x128xf32>
    %42 = arith.addf %39, %41 : vector<256x128xf32>
    %c0_29 = arith.constant 0 : index
    %c0_30 = arith.constant 0 : index
    %43 = vector.load %arg12[%c0_29, %c0_30] : memref<256x128xf32, #tpu.memory_space<vmem>>, vector<256x128xf32>
    tpu.vector_store %arg12[%c0_29, %c0_30], %42 {strides = array<i32>} : memref<256x128xf32, #tpu.memory_space<vmem>>, vector<256x128xf32>,
    return
  }
  func.func @transform_0(%arg0: i32) -> (i32, i32) {
    %c0_i32 = arith.constant 0 : i32
    %c0_i32_0 = arith.constant 0 : i32
    return %arg0, %c0_i32 : i32, i32
  }
  func.func @transform_1(%arg0: i32) -> (i32, i32) {
    %c0_i32 = arith.constant 0 : i32
    %c0_i32_0 = arith.constant 0 : i32
    %c0_i32_1 = arith.constant 0 : i32
    return %c0_i32, %c0_i32_0 : i32, i32
  }
  func.func @transform_2(%arg0: i32) -> (i32, i32) {
    %c0_i32 = arith.constant 0 : i32
    %c0_i32_0 = arith.constant 0 : i32
    %c0_i32_1 = arith.constant 0 : i32
    return %c0_i32, %c0_i32_0 : i32, i32
  }
  func.func @transform_3(%arg0: i32) -> (i32, i32) {
    %c0_i32 = arith.constant 0 : i32
    %c0_i32_0 = arith.constant 0 : i32
    %c0_i32_1 = arith.constant 0 : i32
    return %c0_i32, %c0_i32_0 : i32, i32
  }
  func.func @transform_4(%arg0: i32) -> (i32, i32) {
    %c0_i32 = arith.constant 0 : i32
    %c0_i32_0 = arith.constant 0 : i32
    %c0_i32_1 = arith.constant 0 : i32
    return %c0_i32, %c0_i32_0 : i32, i32
  }
  func.func @transform_5(%arg0: i32) -> (i32, i32) {
    %c0_i32 = arith.constant 0 : i32
    %c0_i32_0 = arith.constant 0 : i32
    %c0_i32_1 = arith.constant 0 : i32
    return %c0_i32, %c0_i32_0 : i32, i32
  }
  func.func @transform_6(%arg0: i32) -> (i32, i32) {
    %c0_i32 = arith.constant 0 : i32
    %c0_i32_0 = arith.constant 0 : i32
    %c0_i32_1 = arith.constant 0 : i32
    return %c0_i32, %c0_i32_0 : i32, i32
  }
  func.func @transform_7(%arg0: i32) -> (i32, i32) {
    %c0_i32 = arith.constant 0 : i32
    %c0_i32_0 = arith.constant 0 : i32
    %c0_i32_1 = arith.constant 0 : i32
    return %c0_i32, %c0_i32_0 : i32, i32
  }
  func.func @transform_8(%arg0: i32) -> (i32, i32) {
    %c0_i32 = arith.constant 0 : i32
    %c0_i32_0 = arith.constant 0 : i32
    %c0_i32_1 = arith.constant 0 : i32
    return %c0_i32, %c0_i32_0 : i32, i32
  }
  func.func @transform_9(%arg0: i32) -> (i32, i32) {
    %c0_i32 = arith.constant 0 : i32
    %c0_i32_0 = arith.constant 0 : i32
    %c0_i32_1 = arith.constant 0 : i32
    return %c0_i32, %c0_i32_0 : i32, i32
  }
  func.func @transform_10(%arg0: i32) -> (i32, i32) {
    %c0_i32 = arith.constant 0 : i32
    %c0_i32_0 = arith.constant 0 : i32
    %c0_i32_1 = arith.constant 0 : i32
    return %c0_i32, %c0_i32_0 : i32, i32
  }
  func.func @transform_11(%arg0: i32) -> (i32, i32) {
    %c0_i32 = arith.constant 0 : i32
    %c0_i32_0 = arith.constant 0 : i32
    return %arg0, %c0_i32 : i32, i32
  }
}

</mosaic_0001>

<bundles_post_ra>
// kernel: tpu_custom_call.1
= control target key start
LH: loop header
LB: loop body
LE: loop exit
PB: predicated region body
PF: predicated region fallthrough
CT: control target
= control target key end

     0   :  { %vm111_vm0 = vcmask 261120   ;;  %s2565_s0 = inlined_call_operand.vmem [shape: f32[256,32], index: 0, kind: input, shape index: {}]   ;;  %s2566_s1 = inlined_call_operand.vmem [shape: bf16[32,128], index: 1, kind: input, shape index: {}]   ;;  %s2567_s2 = inlined_call_operand.vmem [shape: bf16[128,128], index: 2, kind: input, shape index: {}]   ;;  %s2568_s3 = inlined_call_operand.vmem [shape: bf16[128,128], index: 3, kind: input, shape index: {}]   ;;  %s2569_s4 = inlined_call_operand.vmem [shape: bf16[128,128], index: 4, kind: input, shape index: {}]   ;;  %s2570_s5 = inlined_call_operand.vmem [shape: bf16[128,128], index: 5, kind: input, shape index: {}]   ;;  %s2571_s6 = inlined_call_operand.vmem [shape: f32[1,128], index: 6, kind: input, shape index: {}]   ;;  %s2572_s7 = inlined_call_operand.vmem [shape: f32[1,128], index: 7, kind: input, shape index: {}]   ;;  %s2573_s8 = inlined_call_operand.vmem [shape: f32[1,128], index: 8, kind: input, shape index: {}]   ;;  %s2574_s9 = inlined_call_operand.vmem [shape: f32[1,128], index: 9, kind: input, shape index: {}]   ;;  %s2575_s10 = inlined_call_operand.vmem [shape: f32[1,128], index: 10, kind: input, shape index: {}]   ;;  %s2576_s11 = inlined_call_operand.hbm [shape: f32[256,128], index: 11, kind: output, shape index: {}]  }
   0x1   :  { %v2021_v0 = vld [vmem:[%s2566_s1] sm:$0xff]   ;;  %v2022_v1 = vld [vmem:[%s2566_s1 + $0x8] sm:$0xff]   ;;  %v42_v5 = vld [vmem:[%s2565_s0 + $0x10] sm:$0xff] }
   0x2   :  { %1786 = vmatprep.subr.bf16.mxu0 %v2021_v0  ;;  %v40_v2 = vld [vmem:[%s2565_s0] sm:$0xff]  ;;  %v41_v3 = vld [vmem:[%s2565_s0 + $0x8] sm:$0xff]  ;;  %2014 = vmatprep.subr.bf16.mxu1 %v2021_v0  ;;  %v43_v6 = vld [vmem:[%s2565_s0 + $0x18] sm:$0xff] }
   0x3   :  { %1787 = vmatpush3.bf16.msra.mxu0 %v2021_v0  ;;  %v72_v4 = vpack.c.bf16 %v41_v3, %v40_v2  ;;  %2016 = vmatpush3.bf16.msra.mxu1 %v2021_v0  ;;  %v44_v7 = vld [vmem:[%s2565_s0 + $0x20] sm:$0xff]  ;;  %v45_v8 = vld [vmem:[%s2565_s0 + $0x28] sm:$0xff]  ;;  %v73_v9 = vpack.c.bf16 %v43_v6, %v42_v5  ;;  %v58_v14 = vld [vmem:[%s2565_s0 + $0x90] sm:$0xff] }
   0x4   :  { %1788 = vmatprep.subr.bf16.mxu0 %v2022_v1  ;;  %2015 = vmatprep.subr.bf16.mxu1 %v2022_v1  ;;  %v74_v10 = vpack.c.bf16 %v45_v8, %v44_v7  ;;  %v56_v11 = vld [vmem:[%s2565_s0 + $0x80] sm:$0xff]  ;;  %v57_v12 = vld [vmem:[%s2565_s0 + $0x88] sm:$0xff]  ;;  %v59_v15 = vld [vmem:[%s2565_s0 + $0x98] sm:$0xff] }
   0x5   :  { %1790 = vmatprep.mubr.msk.bf16.mxu0 %vm111_vm0, %v72_v4  ;;  %v80_v13 = vpack.c.bf16 %v57_v12, %v56_v11  ;;  %v60_v16 = vld [vmem:[%s2565_s0 + $0xa0] sm:$0xff]  ;;  %v81_v17 = vpack.c.bf16 %v59_v15, %v58_v14  ;;  %v61_v18 = vld [vmem:[%s2565_s0 + $0xa8] sm:$0xff]  ;;  %v46_v19 = vld [vmem:[%s2565_s0 + $0x30] sm:$0xff] }
   0x6   :  { %v47_v20 = vld [vmem:[%s2565_s0 + $0x38] sm:$0xff]  ;;  %v48_v21 = vld [vmem:[%s2565_s0 + $0x40] sm:$0xff]  ;;  %v82_v22 = vpack.c.bf16 %v61_v18, %v60_v16  ;;  %v49_v23 = vld [vmem:[%s2565_s0 + $0x48] sm:$0xff] }
   0x7   :  { %1789 = vmatpush3.bf16.msra.mxu0 %v2022_v1  ;;  %2017 = vmatpush3.bf16.msra.mxu1 %v2022_v1  ;;  %v62_v24 = vld [vmem:[%s2565_s0 + $0xb0] sm:$0xff]  ;;  %v63_v25 = vld [vmem:[%s2565_s0 + $0xb8] sm:$0xff]  ;;  %v64_v26 = vld [vmem:[%s2565_s0 + $0xc0] sm:$0xff]  ;;  %v75_v29 = vpack.c.bf16 %v47_v20, %v46_v19  ;;  %v76_v31 = vpack.c.bf16 %v49_v23, %v48_v21 }
   0x8   :  { %1806 = vmatprep.mubr.msk.bf16.mxu1 %vm111_vm0, %v80_v13  ;;  %v65_v27 = vld [vmem:[%s2565_s0 + $0xc8] sm:$0xff]  ;;  %v2023_v28 = vld [vmem:[%s2567_s2] sm:$0xff]   ;;  %v83_v32 = vpack.c.bf16 %v63_v25, %v62_v24  ;;  %v50_v34 = vld [vmem:[%s2565_s0 + $0x50] sm:$0xff] }
   0x9   :  { %v2024_v30 = vld [vmem:[%s2567_s2 + $0x8] sm:$0xff]   ;;  %1822 = vmatprep.subr.bf16.mxu1 %v2023_v28  ;;  %v84_v33 = vpack.c.bf16 %v65_v27, %v64_v26  ;;  %v51_v35 = vld [vmem:[%s2565_s0 + $0x58] sm:$0xff]  ;;  %v2025_v36 = vld [vmem:[%s2567_s2 + $0x10] sm:$0xff]  }
   0xa   :  { %1791 = vmatmul.mubr.msk.bf16.vlgmr.msra.gmra.mrb[0].mxu0 %vm111_vm0, %v73_v9  ;;  %1807 = vmatmul.mubr.msk.bf16.vlgmr.msra.gmra.mrb[0].mxu1 %vm111_vm0, %v81_v17  ;;  %v52_v37 = vld [vmem:[%s2565_s0 + $0x60] sm:$0xff]  ;;  %v53_v38 = vld [vmem:[%s2565_s0 + $0x68] sm:$0xff]  ;;  %v66_v39 = vld [vmem:[%s2565_s0 + $0xd0] sm:$0xff]  ;;  %v77_v44 = vpack.c.bf16 %v51_v35, %v50_v34 }
   0xb   :  { %1794 = vmatprep.mubr.msk.bf16.mxu0 %vm111_vm0, %v74_v10  ;;  %1810 = vmatprep.mubr.msk.bf16.mxu1 %vm111_vm0, %v82_v22  ;;  %v67_v40 = vld [vmem:[%s2565_s0 + $0xd8] sm:$0xff]  ;;  %v68_v41 = vld [vmem:[%s2565_s0 + $0xe0] sm:$0xff]  ;;  %v69_v42 = vld [vmem:[%s2565_s0 + $0xe8] sm:$0xff]  ;;  %v78_v45 = vpack.c.bf16 %v53_v38, %v52_v37 }
   0xc   :  { %1823 = vmatpush3.bf16.msra.mxu1 %v2023_v28  ;;  %v2026_v43 = vld [vmem:[%s2567_s2 + $0x18] sm:$0xff]   ;;  %v85_v46 = vpack.c.bf16 %v67_v40, %v66_v39  ;;  %v2027_v47 = vld [vmem:[%s2567_s2 + $0x20] sm:$0xff]   ;;  %v86_v48 = vpack.c.bf16 %v69_v42, %v68_v41  ;;  %v54_v49 = vld [vmem:[%s2565_s0 + $0x70] sm:$0xff] }
   0xd   :  { %1824 = vmatprep.subr.bf16.mxu1 %v2024_v30  ;;  %v55_v50 = vld [vmem:[%s2565_s0 + $0x78] sm:$0xff]  ;;  %v70_v51 = vld [vmem:[%s2565_s0 + $0xf0] sm:$0xff] }
   0xe   :  { %v71_v52 = vld [vmem:[%s2565_s0 + $0xf8] sm:$0xff]  ;;  %v79_v53 = vpack.c.bf16 %v55_v50, %v54_v49 }
   0xf   :  { %v87_v54 = vpack.c.bf16 %v71_v52, %v70_v51 }
  0x10   :  { %1825 = vmatpush3.bf16.msra.mxu1 %v2024_v30 }
  0x11   :  { %1826 = vmatprep.subr.bf16.mxu1 %v2025_v36 }
  0x12   :  { %1795 = vmatmul.mubr.msk.bf16.gmra.mrb[4].mxu0 %vm111_vm0, %v75_v29  ;;  %1811 = vmatmul.mubr.msk.bf16.gmra.mrb[4].mxu1 %vm111_vm0, %v83_v32 }
  0x13   :  { %1798 = vmatprep.mubr.msk.bf16.mxu0 %vm111_vm0, %v76_v31  ;;  %1814 = vmatprep.mubr.msk.bf16.mxu1 %vm111_vm0, %v84_v33 }
  0x14   :  { %1827 = vmatpush3.bf16.msra.mxu1 %v2025_v36 }
  0x15   :  { %1828 = vmatprep.subr.bf16.mxu1 %v2026_v43 }
  0x18   :  { %1829 = vmatpush3.bf16.msra.mxu1 %v2026_v43 }
  0x19   :  { %1830 = vmatprep.subr.bf16.mxu1 %v2027_v47 }
  0x1a   :  { %1799 = vmatmul.mubr.msk.bf16.gmra.mrb[8].mxu0 %vm111_vm0, %v77_v44  ;;  %1815 = vmatmul.mubr.msk.bf16.gmra.mrb[8].mxu1 %vm111_vm0, %v85_v46 }
  0x1b   :  { %1802 = vmatprep.mubr.msk.bf16.mxu0 %vm111_vm0, %v78_v45  ;;  %1818 = vmatprep.mubr.msk.bf16.mxu1 %vm111_vm0, %v86_v48 }
  0x1c   :  { %1831 = vmatpush3.bf16.msra.mxu1 %v2027_v47 }
  0x22   :  { %1803 = vmatmul.mubr.msk.bf16.gmra.mrb[12].mxu0 %vm111_vm0, %v79_v53  ;;  %1819 = vmatmul.mubr.msk.bf16.gmra.mrb[12].mxu1 %vm111_vm0, %v87_v54 }
  0x23   :  { %16 = vsyncpa [#allocation3], 0  ;;  %v2028_v55 = vld [vmem:[%s2567_s2 + $0x28] sm:$0xff]   ;;  %v2029_v56 = vld [vmem:[%s2567_s2 + $0x30] sm:$0xff]  }
  0x24   :  { %1832 = vmatprep.subr.bf16.mxu1 %v2028_v55  ;;  %v2030_v57 = vld [vmem:[%s2567_s2 + $0x38] sm:$0xff]   ;;  %v2031_v58 = vld [vmem:[%s2568_s3] sm:$0xff]   ;;  %v2032_v59 = vld [vmem:[%s2568_s3 + $0x8] sm:$0xff]  }
  0x25   :  { %1833 = vmatpush3.bf16.msra.mxu1 %v2028_v55  ;;  %1870 = vmatprep.subr.bf16.mxu0 %v2031_v58  ;;  %v2033_v60 = vld [vmem:[%s2568_s3 + $0x10] sm:$0xff]   ;;  %v2034_v61 = vld [vmem:[%s2568_s3 + $0x18] sm:$0xff]   ;;  %v2035_v62 = vld [vmem:[%s2568_s3 + $0x20] sm:$0xff]  }
  0x26   :  { %1834 = vmatprep.subr.bf16.mxu1 %v2029_v56  ;;  %1871 = vmatpush3.bf16.msra.mxu0 %v2031_v58  ;;  %v2302_v63 = vld [vmem:[%s2571_s6] ss:$0 sm:$0xff] }
  0x27   :  { %1872 = vmatprep.subr.bf16.mxu0 %v2032_v59 }
  0x29   :  { %1835 = vmatpush3.bf16.msra.mxu1 %v2029_v56 }
  0x2a   :  { %1836 = vmatprep.subr.bf16.mxu1 %v2030_v57  ;;  %1873 = vmatpush3.bf16.msra.mxu0 %v2032_v59 }
  0x2b   :  { %1874 = vmatprep.subr.bf16.mxu0 %v2033_v60 }
  0x2d   :  { %1837 = vmatpush3.bf16.msra.mxu1 %v2030_v57 }
  0x2e   :  { %1875 = vmatpush3.bf16.msra.mxu0 %v2033_v60 }
  0x2f   :  { %1876 = vmatprep.subr.bf16.mxu0 %v2034_v61 }
  0x32   :  { %1877 = vmatpush3.bf16.msra.mxu0 %v2034_v61 }
  0x33   :  { %1878 = vmatprep.subr.bf16.mxu0 %v2035_v62 }
  0x36   :  { %1879 = vmatpush3.bf16.msra.mxu0 %v2035_v62 }
  0xdd   :  { %v1792_v0 = vpop.f32.mrb[0].mxu0  ;;  %v1808_v3 = vpop.f32.mrb[0].mxu1 }
  0xde   :  { %v203_v1 = vadd.f32 %v1792_v0, %v2302_v63  ;;  %v194_v2 = vpop.f32.mrb[1].mxu0  ;;  %v267_v6 = vadd.f32 %v1808_v3, %v2302_v63  ;;  %v258_v7 = vpop.f32.mrb[1].mxu1 }
  0xdf   :  { %v195_v4 = vadd.f32 %v2302_v63, %v194_v2  ;;  %v1793_v5 = vpop.f32.mrb[2].mxu0  ;;  %v259_v11 = vadd.f32 %v2302_v63, %v258_v7  ;;  %v1809_v12 = vpop.f32.mrb[2].mxu1 }
  0xe0   :  { %v323_v8 = vmul.f32 0.01, %v203_v1  ;;  %v206_v9 = vadd.f32 %v1793_v5, %v2302_v63  ;;  %v197_v10 = vpop.f32.mrb[3].mxu0  ;;  %v339_v15 = vmul.f32 0.01, %v267_v6  ;;  %v270_v16 = vadd.f32 %v1809_v12, %v2302_v63  ;;  %v261_v17 = vpop.f32.mrb[3].mxu1 }
  0xe1   :  { %v321_v13 = vmul.f32 0.01, %v195_v4  ;;  %v198_v14 = vadd.f32 %v2302_v63, %v197_v10  ;;  %v337_v19 = vmul.f32 0.01, %v259_v11  ;;  %v262_v20 = vadd.f32 %v2302_v63, %v261_v17 }
  0xe2   :  { %v324_v18 = vmul.f32 0.01, %v206_v9  ;;  %v371_v22 = vmax.f32 %v267_v6, %v339_v15  ;;  %v340_v23 = vmul.f32 0.01, %v270_v16  ;;  %v355_v24 = vmax.f32 %v203_v1, %v323_v8 }
  0xe3   :  { %v322_v21 = vmul.f32 0.01, %v198_v14  ;;  %v369_v26 = vmax.f32 %v259_v11, %v337_v19  ;;  %v338_v27 = vmul.f32 0.01, %v262_v20  ;;  %v353_v28 = vmax.f32 %v195_v4, %v321_v13 }
  0xe4   :  { %v356_v25 = vmax.f32 %v206_v9, %v324_v18  ;;  %v372_v31 = vmax.f32 %v270_v16, %v340_v23 }
  0xe5   :  { %v354_v29 = vmax.f32 %v198_v14, %v322_v21  ;;  %v1796_v30 = vpop.f32.mrb[4].mxu0  ;;  %v370_v35 = vmax.f32 %v262_v20, %v338_v27  ;;  %v1812_v36 = vpop.f32.mrb[4].mxu1 }
  0xe6   :  { %v386_v32 = vpack.c.bf16 %v356_v25, %v355_v24  ;;  %v219_v33 = vadd.f32 %v1796_v30, %v2302_v63  ;;  %v210_v34 = vpop.f32.mrb[5].mxu0  ;;  %v283_v40 = vadd.f32 %v1812_v36, %v2302_v63  ;;  %v274_v41 = vpop.f32.mrb[5].mxu1  ;;  %v2315_v42 = vpack.c.bf16 %v372_v31, %v371_v22 }
  0xe7   :  { %v211_v37 = vadd.f32 %v2302_v63, %v210_v34  ;;  %v1797_v38 = vpop.f32.mrb[6].mxu0  ;;  %v385_v39 = vpack.c.bf16 %v354_v29, %v353_v28  ;;  %v275_v46 = vadd.f32 %v2302_v63, %v274_v41  ;;  %v1813_v47 = vpop.f32.mrb[6].mxu1  ;;  %v2319_v48 = vpack.c.bf16 %v370_v35, %v369_v26 }
  0xe8   :  { %v327_v43 = vmul.f32 0.01, %v219_v33  ;;  %v222_v44 = vadd.f32 %v1797_v38, %v2302_v63  ;;  %v213_v45 = vpop.f32.mrb[7].mxu0  ;;  %v343_v51 = vmul.f32 0.01, %v283_v40  ;;  %v286_v52 = vadd.f32 %v1813_v47, %v2302_v63  ;;  %v277_v53 = vpop.f32.mrb[7].mxu1 }
  0xe9   :  { %v325_v49 = vmul.f32 0.01, %v211_v37  ;;  %v214_v50 = vadd.f32 %v2302_v63, %v213_v45  ;;  %1838 = vmatprep.mubr.bf16.mxu1 %v385_v39  ;;  %v341_v55 = vmul.f32 0.01, %v275_v46  ;;  %v278_v56 = vadd.f32 %v2302_v63, %v277_v53 }
  0xea   :  { %v328_v54 = vmul.f32 0.01, %v222_v44  ;;  %1839 = vmatmul.mubr.bf16.vlgmr.msra.gmra.mrb[16].mxu1 %v386_v32  ;;  %v375_v58 = vmax.f32 %v283_v40, %v343_v51  ;;  %v344_v59 = vmul.f32 0.01, %v286_v52  ;;  %v359_v60 = vmax.f32 %v219_v33, %v327_v43 }
  0xeb   :  { %v326_v57 = vmul.f32 0.01, %v214_v50  ;;  %v373_v62 = vmax.f32 %v275_v46, %v341_v55  ;;  %v342_v0 = vmul.f32 0.01, %v278_v56  ;;  %v357_v1 = vmax.f32 %v211_v37, %v325_v49 }
  0xec   :  { %v360_v61 = vmax.f32 %v222_v44, %v328_v54  ;;  %v376_v4 = vmax.f32 %v286_v52, %v344_v59 }
  0xed   :  { %v358_v2 = vmax.f32 %v214_v50, %v326_v57  ;;  %v1800_v3 = vpop.f32.mrb[8].mxu0  ;;  %v374_v8 = vmax.f32 %v278_v56, %v342_v0  ;;  %v1816_v9 = vpop.f32.mrb[8].mxu1 }
  0xee   :  { %v235_v5 = vadd.f32 %v1800_v3, %v2302_v63  ;;  %v226_v6 = vpop.f32.mrb[9].mxu0  ;;  %v388_v7 = vpack.c.bf16 %v360_v61, %v359_v60  ;;  %v299_v13 = vadd.f32 %v1816_v9, %v2302_v63  ;;  %v290_v14 = vpop.f32.mrb[9].mxu1  ;;  %v2327_v15 = vpack.c.bf16 %v376_v4, %v375_v58 }
  0xef   :  { %v227_v10 = vadd.f32 %v2302_v63, %v226_v6  ;;  %v1801_v11 = vpop.f32.mrb[10].mxu0  ;;  %v387_v12 = vpack.c.bf16 %v358_v2, %v357_v1  ;;  %v291_v19 = vadd.f32 %v2302_v63, %v290_v14  ;;  %v1817_v20 = vpop.f32.mrb[10].mxu1  ;;  %v2331_v21 = vpack.c.bf16 %v374_v8, %v373_v62 }
  0xf0   :  { %v331_v16 = vmul.f32 0.01, %v235_v5  ;;  %v238_v17 = vadd.f32 %v1801_v11, %v2302_v63  ;;  %v229_v18 = vpop.f32.mrb[11].mxu0  ;;  %v347_v24 = vmul.f32 0.01, %v299_v13  ;;  %v302_v25 = vadd.f32 %v1817_v20, %v2302_v63  ;;  %v293_v26 = vpop.f32.mrb[11].mxu1 }
  0xf1   :  { %v329_v22 = vmul.f32 0.01, %v227_v10  ;;  %v230_v23 = vadd.f32 %v2302_v63, %v229_v18  ;;  %1842 = vmatprep.mubr.bf16.mxu1 %v387_v12  ;;  %v345_v28 = vmul.f32 0.01, %v291_v19  ;;  %v294_v29 = vadd.f32 %v2302_v63, %v293_v26  ;;  %v2045_v26 = vld [vmem:[%s2569_s4 + $0x30] sm:$0xff]  }
  0xf2   :  { %v332_v27 = vmul.f32 0.01, %v238_v17  ;;  %1843 = vmatmul.mubr.bf16.gmra.mrb[20].mxu1 %v388_v7  ;;  %v379_v31 = vmax.f32 %v299_v13, %v347_v24  ;;  %v348_v32 = vmul.f32 0.01, %v302_v25  ;;  %v363_v33 = vmax.f32 %v235_v5, %v331_v16  ;;  %v2043_v24 = vld [vmem:[%s2569_s4 + $0x20] sm:$0xff]  }
  0xf3   :  { %v330_v30 = vmul.f32 0.01, %v230_v23  ;;  %v377_v35 = vmax.f32 %v291_v19, %v345_v28  ;;  %v346_v36 = vmul.f32 0.01, %v294_v29  ;;  %v361_v37 = vmax.f32 %v227_v10, %v329_v22  ;;  %v2041_v22 = vld [vmem:[%s2569_s4 + $0x10] sm:$0xff]  }
  0xf4   :  { %v364_v34 = vmax.f32 %v238_v17, %v332_v27  ;;  %v380_v40 = vmax.f32 %v302_v25, %v348_v32  ;;  %v2044_v25 = vld [vmem:[%s2569_s4 + $0x28] sm:$0xff]   ;;  %v2381_v27 = vld [vmem:[%s2572_s7] ss:$0 sm:$0xff] }
  0xf5   :  { %v362_v38 = vmax.f32 %v230_v23, %v330_v30  ;;  %v1804_v39 = vpop.f32.mrb[12].mxu0  ;;  %v378_v45 = vmax.f32 %v294_v29, %v346_v36  ;;  %v1820_v46 = vpop.f32.mrb[12].mxu1  ;;  %v2042_v23 = vld [vmem:[%s2569_s4 + $0x18] sm:$0xff]  }
  0xf6   :  { %v251_v41 = vadd.f32 %v1804_v39, %v2302_v63  ;;  %v242_v43 = vpop.f32.mrb[13].mxu0  ;;  %v390_v44 = vpack.c.bf16 %v364_v34, %v363_v33  ;;  %v315_v51 = vadd.f32 %v1820_v46, %v2302_v63  ;;  %v306_v52 = vpop.f32.mrb[13].mxu1  ;;  %v398_v53 = vpack.c.bf16 %v380_v40, %v379_v31 }
  0xf7   :  { %v243_v47 = vadd.f32 %v2302_v63, %v242_v43  ;;  %v1805_v49 = vpop.f32.mrb[14].mxu0  ;;  %v389_v50 = vpack.c.bf16 %v362_v38, %v361_v37  ;;  %v307_v57 = vadd.f32 %v2302_v63, %v306_v52  ;;  %v1821_v58 = vpop.f32.mrb[14].mxu1  ;;  %v397_v59 = vpack.c.bf16 %v378_v45, %v377_v35 }
  0xf8   :  { %v335_v54 = vmul.f32 0.01, %v251_v41  ;;  %v254_v55 = vadd.f32 %v1805_v49, %v2302_v63  ;;  %v245_v56 = vpop.f32.mrb[15].mxu0  ;;  %v351_v62 = vmul.f32 0.01, %v315_v51  ;;  %v318_v0 = vadd.f32 %v1821_v58, %v2302_v63  ;;  %v309_v1 = vpop.f32.mrb[15].mxu1 }
  0xf9   :  { %v333_v60 = vmul.f32 0.01, %v243_v47  ;;  %v246_v61 = vadd.f32 %v2302_v63, %v245_v56  ;;  %1846 = vmatprep.mubr.bf16.mxu1 %v389_v50  ;;  %v349_v3 = vmul.f32 0.01, %v307_v57  ;;  %v310_v4 = vadd.f32 %v2302_v63, %v309_v1  ;;  %v2036_v63 = vld [vmem:[%s2568_s3 + $0x28] sm:$0xff]  }
  0xfa   :  { %v336_v2 = vmul.f32 0.01, %v254_v55  ;;  %1847 = vmatmul.mubr.bf16.gmra.mrb[24].mxu1 %v390_v44  ;;  %v383_v6 = vmax.f32 %v315_v51, %v351_v62  ;;  %v352_v7 = vmul.f32 0.01, %v318_v0  ;;  %v367_v8 = vmax.f32 %v251_v41, %v335_v54  ;;  %1880 = vmatprep.subr.bf16.mxu0 %v2036_v63 }
  0xfb   :  { %v334_v5 = vmul.f32 0.01, %v246_v61  ;;  %v381_v10 = vmax.f32 %v307_v57, %v349_v3  ;;  %v350_v11 = vmul.f32 0.01, %v310_v4  ;;  %v365_v12 = vmax.f32 %v243_v47, %v333_v60  ;;  %1881 = vmatpush3.bf16.msra.mxu0 %v2036_v63 }
  0xfc   :  { %v368_v9 = vmax.f32 %v254_v55, %v336_v2  ;;  %v384_v14 = vmax.f32 %v318_v0, %v352_v7 }
  0xfd   :  { %v366_v13 = vmax.f32 %v246_v61, %v334_v5  ;;  %v382_v17 = vmax.f32 %v310_v4, %v350_v11 }
  0xfe   :  { %v392_v16 = vpack.c.bf16 %v368_v9, %v367_v8  ;;  %v400_v19 = vpack.c.bf16 %v384_v14, %v383_v6 }
  0xff   :  { %v391_v18 = vpack.c.bf16 %v366_v13, %v365_v12  ;;  %v399_v20 = vpack.c.bf16 %v382_v17, %v381_v10 }
 0x101   :  { %1850 = vmatprep.mubr.bf16.mxu1 %v391_v18 }
 0x102   :  { %1851 = vmatmul.mubr.bf16.gmra.mrb[28].mxu1 %v392_v16 }
 0x103   :  { %1854 = vmatprep.mubr.bf16.mxu1 %v2319_v48  ;;  %v2037_v48 = vld [vmem:[%s2568_s3 + $0x30] sm:$0xff]  }
 0x104   :  { %1882 = vmatprep.subr.bf16.mxu0 %v2037_v48 }
 0x105   :  { %1883 = vmatpush3.bf16.msra.mxu0 %v2037_v48 }
 0x10a   :  { %1855 = vmatmul.mubr.bf16.gmra.mrb[32].mxu1 %v2315_v42  ;;  %v2038_v42 = vld [vmem:[%s2568_s3 + $0x38] sm:$0xff]  }
 0x10b   :  { %1858 = vmatprep.mubr.bf16.mxu1 %v2331_v21  ;;  %1884 = vmatprep.subr.bf16.mxu0 %v2038_v42  ;;  %v2040_v21 = vld [vmem:[%s2569_s4 + $0x8] sm:$0xff]  }
 0x10c   :  { %1885 = vmatpush3.bf16.msra.mxu0 %v2038_v42 }
 0x112   :  { %1859 = vmatmul.mubr.bf16.gmra.mrb[36].mxu1 %v2327_v15  ;;  %v2039_v15 = vld [vmem:[%s2569_s4] sm:$0xff]  }
 0x113   :  { %1862 = vmatprep.mubr.bf16.mxu1 %v397_v59  ;;  %1918 = vmatprep.subr.bf16.mxu1 %v2039_v15 }
 0x114   :  { %1919 = vmatpush3.bf16.msra.mxu1 %v2039_v15 }
 0x115   :  { %1920 = vmatprep.subr.bf16.mxu1 %v2040_v21 }
 0x118   :  { %1921 = vmatpush3.bf16.msra.mxu1 %v2040_v21 }
 0x119   :  { %1922 = vmatprep.subr.bf16.mxu1 %v2041_v22 }
 0x11a   :  { %1863 = vmatmul.mubr.bf16.gmra.mrb[40].mxu1 %v398_v53 }
 0x11b   :  { %1866 = vmatprep.mubr.bf16.mxu1 %v399_v20 }
 0x11c   :  { %1923 = vmatpush3.bf16.msra.mxu1 %v2041_v22 }
 0x11d   :  { %1924 = vmatprep.subr.bf16.mxu1 %v2042_v23 }
 0x120   :  { %1925 = vmatpush3.bf16.msra.mxu1 %v2042_v23 }
 0x121   :  { %1926 = vmatprep.subr.bf16.mxu1 %v2043_v24 }
 0x122   :  { %1867 = vmatmul.mubr.bf16.gmra.mrb[44].mxu1 %v400_v19 }
 0x124   :  { %1927 = vmatpush3.bf16.msra.mxu1 %v2043_v24 }
 0x125   :  { %1928 = vmatprep.subr.bf16.mxu1 %v2044_v25 }
 0x128   :  { %1929 = vmatpush3.bf16.msra.mxu1 %v2044_v25 }
 0x129   :  { %1930 = vmatprep.subr.bf16.mxu1 %v2045_v26 }
 0x12c   :  { %1931 = vmatpush3.bf16.msra.mxu1 %v2045_v26 }
 0x1bd   :  { %v1840_v28 = vpop.f32.mrb[16].mxu1 }
 0x1be   :  { %v515_v29 = vadd.f32 %v1840_v28, %v2381_v27  ;;  %v506_v30 = vpop.f32.mrb[17].mxu1 }
 0x1bf   :  { %v507_v31 = vadd.f32 %v2381_v27, %v506_v30  ;;  %v1841_v32 = vpop.f32.mrb[18].mxu1 }
 0x1c0   :  { %v635_v33 = vmul.f32 0.01, %v515_v29  ;;  %v518_v34 = vadd.f32 %v1841_v32, %v2381_v27  ;;  %v509_v35 = vpop.f32.mrb[19].mxu1 }
 0x1c1   :  { %v633_v36 = vmul.f32 0.01, %v507_v31  ;;  %v510_v37 = vadd.f32 %v2381_v27, %v509_v35 }
 0x1c2   :  { %v636_v38 = vmul.f32 0.01, %v518_v34  ;;  %v667_v40 = vmax.f32 %v515_v29, %v635_v33 }
 0x1c3   :  { %v634_v39 = vmul.f32 0.01, %v510_v37  ;;  %v665_v43 = vmax.f32 %v507_v31, %v633_v36 }
 0x1c4   :  { %v668_v41 = vmax.f32 %v518_v34, %v636_v38 }
 0x1c5   :  { %v666_v44 = vmax.f32 %v510_v37, %v634_v39  ;;  %v1844_v45 = vpop.f32.mrb[20].mxu1 }
 0x1c6   :  { %v698_v46 = vpack.c.bf16 %v668_v41, %v667_v40  ;;  %v531_v47 = vadd.f32 %v1844_v45, %v2381_v27  ;;  %v522_v49 = vpop.f32.mrb[21].mxu1 }
 0x1c7   :  { %v523_v50 = vadd.f32 %v2381_v27, %v522_v49  ;;  %v1845_v51 = vpop.f32.mrb[22].mxu1  ;;  %v697_v52 = vpack.c.bf16 %v666_v44, %v665_v43 }
 0x1c8   :  { %v639_v53 = vmul.f32 0.01, %v531_v47  ;;  %v534_v54 = vadd.f32 %v1845_v51, %v2381_v27  ;;  %v525_v55 = vpop.f32.mrb[23].mxu1 }
 0x1c9   :  { %v637_v56 = vmul.f32 0.01, %v523_v50  ;;  %v526_v57 = vadd.f32 %v2381_v27, %v525_v55  ;;  %1886 = vmatprep.mubr.bf16.mxu0 %v697_v52 }
 0x1ca   :  { %v640_v58 = vmul.f32 0.01, %v534_v54  ;;  %1887 = vmatmul.mubr.bf16.vlgmr.msra.gmra.mrb[16].mxu0 %v698_v46  ;;  %v671_v60 = vmax.f32 %v531_v47, %v639_v53 }
 0x1cb   :  { %v638_v59 = vmul.f32 0.01, %v526_v57  ;;  %v669_v62 = vmax.f32 %v523_v50, %v637_v56 }
 0x1cc   :  { %v672_v61 = vmax.f32 %v534_v54, %v640_v58 }
 0x1cd   :  { %v670_v0 = vmax.f32 %v526_v57, %v638_v59  ;;  %v1848_v1 = vpop.f32.mrb[24].mxu1 }
 0x1ce   :  { %v547_v2 = vadd.f32 %v1848_v1, %v2381_v27  ;;  %v538_v3 = vpop.f32.mrb[25].mxu1  ;;  %v700_v4 = vpack.c.bf16 %v672_v61, %v671_v60 }
 0x1cf   :  { %v539_v5 = vadd.f32 %v2381_v27, %v538_v3  ;;  %v1849_v6 = vpop.f32.mrb[26].mxu1  ;;  %v699_v7 = vpack.c.bf16 %v670_v0, %v669_v62 }
 0x1d0   :  { %v643_v8 = vmul.f32 0.01, %v547_v2  ;;  %v550_v9 = vadd.f32 %v1849_v6, %v2381_v27  ;;  %v541_v10 = vpop.f32.mrb[27].mxu1 }
 0x1d1   :  { %v641_v11 = vmul.f32 0.01, %v539_v5  ;;  %v542_v12 = vadd.f32 %v2381_v27, %v541_v10  ;;  %1890 = vmatprep.mubr.bf16.mxu0 %v699_v7 }
 0x1d2   :  { %v644_v13 = vmul.f32 0.01, %v550_v9  ;;  %1891 = vmatmul.mubr.bf16.gmra.mrb[20].mxu0 %v700_v4  ;;  %v675_v16 = vmax.f32 %v547_v2, %v643_v8 }
 0x1d3   :  { %v642_v14 = vmul.f32 0.01, %v542_v12  ;;  %v673_v18 = vmax.f32 %v539_v5, %v641_v11 }
 0x1d4   :  { %v676_v17 = vmax.f32 %v550_v9, %v644_v13 }
 0x1d5   :  { %v674_v19 = vmax.f32 %v542_v12, %v642_v14  ;;  %v1852_v20 = vpop.f32.mrb[28].mxu1 }
 0x1d6   :  { %v563_v63 = vadd.f32 %v1852_v20, %v2381_v27  ;;  %v554_v48 = vpop.f32.mrb[29].mxu1  ;;  %v702_v42 = vpack.c.bf16 %v676_v17, %v675_v16 }
 0x1d7   :  { %v555_v15 = vadd.f32 %v2381_v27, %v554_v48  ;;  %v1853_v21 = vpop.f32.mrb[30].mxu1  ;;  %v701_v22 = vpack.c.bf16 %v674_v19, %v673_v18 }
 0x1d8   :  { %v647_v23 = vmul.f32 0.01, %v563_v63  ;;  %v566_v24 = vadd.f32 %v1853_v21, %v2381_v27  ;;  %v557_v25 = vpop.f32.mrb[31].mxu1 }
 0x1d9   :  { %v645_v26 = vmul.f32 0.01, %v555_v15  ;;  %v558_v28 = vadd.f32 %v2381_v27, %v557_v25  ;;  %1894 = vmatprep.mubr.bf16.mxu0 %v701_v22 }
 0x1da   :  { %v648_v29 = vmul.f32 0.01, %v566_v24  ;;  %1895 = vmatmul.mubr.bf16.gmra.mrb[24].mxu0 %v702_v42  ;;  %v679_v31 = vmax.f32 %v563_v63, %v647_v23 }
 0x1db   :  { %v646_v30 = vmul.f32 0.01, %v558_v28  ;;  %v677_v33 = vmax.f32 %v555_v15, %v645_v26 }
 0x1dc   :  { %v680_v32 = vmax.f32 %v566_v24, %v648_v29 }
 0x1dd   :  { %v678_v34 = vmax.f32 %v558_v28, %v646_v30  ;;  %v1856_v35 = vpop.f32.mrb[32].mxu1 }
 0x1de   :  { %v579_v36 = vadd.f32 %v1856_v35, %v2381_v27  ;;  %v570_v37 = vpop.f32.mrb[33].mxu1  ;;  %v704_v38 = vpack.c.bf16 %v680_v32, %v679_v31 }
 0x1df   :  { %v571_v39 = vadd.f32 %v2381_v27, %v570_v37  ;;  %v1857_v40 = vpop.f32.mrb[34].mxu1  ;;  %v703_v41 = vpack.c.bf16 %v678_v34, %v677_v33 }
 0x1e0   :  { %v651_v43 = vmul.f32 0.01, %v579_v36  ;;  %v582_v44 = vadd.f32 %v1857_v40, %v2381_v27  ;;  %v573_v45 = vpop.f32.mrb[35].mxu1 }
 0x1e1   :  { %v649_v46 = vmul.f32 0.01, %v571_v39  ;;  %v574_v47 = vadd.f32 %v2381_v27, %v573_v45  ;;  %1898 = vmatprep.mubr.bf16.mxu0 %v703_v41 }
 0x1e2   :  { %v652_v49 = vmul.f32 0.01, %v582_v44  ;;  %1899 = vmatmul.mubr.bf16.gmra.mrb[28].mxu0 %v704_v38  ;;  %v683_v51 = vmax.f32 %v579_v36, %v651_v43 }
 0x1e3   :  { %v650_v50 = vmul.f32 0.01, %v574_v47  ;;  %v681_v53 = vmax.f32 %v571_v39, %v649_v46 }
 0x1e4   :  { %v684_v52 = vmax.f32 %v582_v44, %v652_v49  ;;  %v2048_v49 = vld [vmem:[%s2570_s5 + $0x8] sm:$0xff]  }
 0x1e5   :  { %v682_v54 = vmax.f32 %v574_v47, %v650_v50  ;;  %v1860_v55 = vpop.f32.mrb[36].mxu1  ;;  %v2046_v47 = vld [vmem:[%s2569_s4 + $0x38] sm:$0xff]   ;;  %v2049_v50 = vld [vmem:[%s2570_s5 + $0x10] sm:$0xff]  }
 0x1e6   :  { %v595_v56 = vadd.f32 %v1860_v55, %v2381_v27  ;;  %v586_v57 = vpop.f32.mrb[37].mxu1  ;;  %v706_v58 = vpack.c.bf16 %v684_v52, %v683_v51  ;;  %1932 = vmatprep.subr.bf16.mxu1 %v2046_v47  ;;  %v2050_v51 = vld [vmem:[%s2570_s5 + $0x18] sm:$0xff]   ;;  %v2051_v52 = vld [vmem:[%s2570_s5 + $0x20] sm:$0xff]  }
 0x1e7   :  { %v587_v59 = vadd.f32 %v2381_v27, %v586_v57  ;;  %v1861_v60 = vpop.f32.mrb[38].mxu1  ;;  %v705_v61 = vpack.c.bf16 %v682_v54, %v681_v53  ;;  %1933 = vmatpush3.bf16.msra.mxu1 %v2046_v47  ;;  %v2052_v53 = vld [vmem:[%s2570_s5 + $0x28] sm:$0xff]   ;;  %v2053_v54 = vld [vmem:[%s2570_s5 + $0x30] sm:$0xff]   ;;  %v2442_v55 = vld [vmem:[%s2573_s8] ss:$0 sm:$0xff] }
 0x1e8   :  { %v655_v62 = vmul.f32 0.01, %v595_v56  ;;  %v598_v0 = vadd.f32 %v1861_v60, %v2381_v27  ;;  %v589_v1 = vpop.f32.mrb[39].mxu1 }
 0x1e9   :  { %v653_v2 = vmul.f32 0.01, %v587_v59  ;;  %v590_v3 = vadd.f32 %v2381_v27, %v589_v1  ;;  %1902 = vmatprep.mubr.bf16.mxu0 %v705_v61 }
 0x1ea   :  { %v656_v4 = vmul.f32 0.01, %v598_v0  ;;  %1903 = vmatmul.mubr.bf16.gmra.mrb[32].mxu0 %v706_v58  ;;  %v687_v6 = vmax.f32 %v595_v56, %v655_v62 }
 0x1eb   :  { %v654_v5 = vmul.f32 0.01, %v590_v3  ;;  %v685_v8 = vmax.f32 %v587_v59, %v653_v2 }
 0x1ec   :  { %v688_v7 = vmax.f32 %v598_v0, %v656_v4 }
 0x1ed   :  { %v686_v9 = vmax.f32 %v590_v3, %v654_v5  ;;  %v1864_v10 = vpop.f32.mrb[40].mxu1 }
 0x1ee   :  { %v611_v11 = vadd.f32 %v1864_v10, %v2381_v27  ;;  %v602_v12 = vpop.f32.mrb[41].mxu1  ;;  %v708_v13 = vpack.c.bf16 %v688_v7, %v687_v6 }
 0x1ef   :  { %v603_v14 = vadd.f32 %v2381_v27, %v602_v12  ;;  %v1865_v16 = vpop.f32.mrb[42].mxu1  ;;  %v707_v17 = vpack.c.bf16 %v686_v9, %v685_v8 }
 0x1f0   :  { %v659_v18 = vmul.f32 0.01, %v611_v11  ;;  %v614_v19 = vadd.f32 %v1865_v16, %v2381_v27  ;;  %v605_v20 = vpop.f32.mrb[43].mxu1 }
 0x1f1   :  { %v657_v63 = vmul.f32 0.01, %v603_v14  ;;  %v606_v48 = vadd.f32 %v2381_v27, %v605_v20  ;;  %1906 = vmatprep.mubr.bf16.mxu0 %v707_v17 }
 0x1f2   :  { %v660_v42 = vmul.f32 0.01, %v614_v19  ;;  %1907 = vmatmul.mubr.bf16.gmra.mrb[36].mxu0 %v708_v13  ;;  %v691_v21 = vmax.f32 %v611_v11, %v659_v18 }
 0x1f3   :  { %v658_v15 = vmul.f32 0.01, %v606_v48  ;;  %v689_v23 = vmax.f32 %v603_v14, %v657_v63 }
 0x1f4   :  { %v692_v22 = vmax.f32 %v614_v19, %v660_v42 }
 0x1f5   :  { %v690_v24 = vmax.f32 %v606_v48, %v658_v15  ;;  %v1868_v25 = vpop.f32.mrb[44].mxu1 }
 0x1f6   :  { %v627_v26 = vadd.f32 %v1868_v25, %v2381_v27  ;;  %v618_v28 = vpop.f32.mrb[45].mxu1  ;;  %v710_v29 = vpack.c.bf16 %v692_v22, %v691_v21 }
 0x1f7   :  { %v619_v30 = vadd.f32 %v2381_v27, %v618_v28  ;;  %v1869_v31 = vpop.f32.mrb[46].mxu1  ;;  %v709_v32 = vpack.c.bf16 %v690_v24, %v689_v23 }
 0x1f8   :  { %v663_v33 = vmul.f32 0.01, %v627_v26  ;;  %v630_v34 = vadd.f32 %v1869_v31, %v2381_v27  ;;  %v621_v35 = vpop.f32.mrb[47].mxu1 }
 0x1f9   :  { %v661_v36 = vmul.f32 0.01, %v619_v30  ;;  %v622_v37 = vadd.f32 %v2381_v27, %v621_v35  ;;  %1910 = vmatprep.mubr.bf16.mxu0 %v709_v32  ;;  %v2047_v27 = vld [vmem:[%s2570_s5] sm:$0xff]  }
 0x1fa   :  { %v664_v38 = vmul.f32 0.01, %v630_v34  ;;  %1911 = vmatmul.mubr.bf16.gmra.mrb[40].mxu0 %v710_v29  ;;  %v695_v40 = vmax.f32 %v627_v26, %v663_v33  ;;  %1966 = vmatprep.subr.bf16.mxu0 %v2047_v27 }
 0x1fb   :  { %v662_v39 = vmul.f32 0.01, %v622_v37  ;;  %v693_v43 = vmax.f32 %v619_v30, %v661_v36  ;;  %1967 = vmatpush3.bf16.msra.mxu0 %v2047_v27 }
 0x1fc   :  { %v696_v41 = vmax.f32 %v630_v34, %v664_v38  ;;  %1968 = vmatprep.subr.bf16.mxu0 %v2048_v49 }
 0x1fd   :  { %v694_v44 = vmax.f32 %v622_v37, %v662_v39 }
 0x1fe   :  { %v712_v45 = vpack.c.bf16 %v696_v41, %v695_v40 }
 0x1ff   :  { %v711_v46 = vpack.c.bf16 %v694_v44, %v693_v43  ;;  %1969 = vmatpush3.bf16.msra.mxu0 %v2048_v49 }
 0x200   :  { %1970 = vmatprep.subr.bf16.mxu0 %v2049_v50 }
 0x201   :  { %1914 = vmatprep.mubr.bf16.mxu0 %v711_v46 }
 0x202   :  { %1915 = vmatmul.mubr.bf16.gmra.mrb[44].mxu0 %v712_v45 }
 0x203   :  { %1971 = vmatpush3.bf16.msra.mxu0 %v2049_v50 }
 0x204   :  { %1972 = vmatprep.subr.bf16.mxu0 %v2050_v51 }
 0x207   :  { %1973 = vmatpush3.bf16.msra.mxu0 %v2050_v51 }
 0x208   :  { %1974 = vmatprep.subr.bf16.mxu0 %v2051_v52 }
 0x20b   :  { %1975 = vmatpush3.bf16.msra.mxu0 %v2051_v52 }
 0x20c   :  { %1976 = vmatprep.subr.bf16.mxu0 %v2052_v53 }
 0x20f   :  { %1977 = vmatpush3.bf16.msra.mxu0 %v2052_v53 }
 0x210   :  { %1978 = vmatprep.subr.bf16.mxu0 %v2053_v54 }
 0x213   :  { %1979 = vmatpush3.bf16.msra.mxu0 %v2053_v54 }
 0x29d   :  { %v1888_v56 = vpop.f32.mrb[16].mxu0 }
 0x29e   :  { %v827_v57 = vadd.f32 %v1888_v56, %v2442_v55  ;;  %v818_v58 = vpop.f32.mrb[17].mxu0 }
 0x29f   :  { %v819_v59 = vadd.f32 %v2442_v55, %v818_v58  ;;  %v1889_v60 = vpop.f32.mrb[18].mxu0 }
 0x2a0   :  { %v947_v61 = vmul.f32 0.01, %v827_v57  ;;  %v830_v62 = vadd.f32 %v1889_v60, %v2442_v55  ;;  %v821_v0 = vpop.f32.mrb[19].mxu0 }
 0x2a1   :  { %v945_v1 = vmul.f32 0.01, %v819_v59  ;;  %v822_v2 = vadd.f32 %v2442_v55, %v821_v0 }
 0x2a2   :  { %v948_v3 = vmul.f32 0.01, %v830_v62  ;;  %v979_v5 = vmax.f32 %v827_v57, %v947_v61 }
 0x2a3   :  { %v946_v4 = vmul.f32 0.01, %v822_v2  ;;  %v977_v7 = vmax.f32 %v819_v59, %v945_v1 }
 0x2a4   :  { %v980_v6 = vmax.f32 %v830_v62, %v948_v3 }
 0x2a5   :  { %v978_v8 = vmax.f32 %v822_v2, %v946_v4  ;;  %v1892_v9 = vpop.f32.mrb[20].mxu0 }
 0x2a6   :  { %v1010_v10 = vpack.c.bf16 %v980_v6, %v979_v5  ;;  %v843_v11 = vadd.f32 %v1892_v9, %v2442_v55  ;;  %v834_v12 = vpop.f32.mrb[21].mxu0 }
 0x2a7   :  { %v835_v13 = vadd.f32 %v2442_v55, %v834_v12  ;;  %v1893_v14 = vpop.f32.mrb[22].mxu0  ;;  %v1009_v16 = vpack.c.bf16 %v978_v8, %v977_v7 }
 0x2a8   :  { %v951_v17 = vmul.f32 0.01, %v843_v11  ;;  %v846_v18 = vadd.f32 %v1893_v14, %v2442_v55  ;;  %v837_v19 = vpop.f32.mrb[23].mxu0 }
 0x2a9   :  { %v949_v20 = vmul.f32 0.01, %v835_v13  ;;  %v838_v63 = vadd.f32 %v2442_v55, %v837_v19  ;;  %1934 = vmatprep.mubr.bf16.mxu1 %v1009_v16 }
 0x2aa   :  { %v952_v48 = vmul.f32 0.01, %v846_v18  ;;  %1935 = vmatmul.mubr.bf16.vlgmr.msra.gmra.mrb[48].mxu1 %v1010_v10  ;;  %v983_v15 = vmax.f32 %v843_v11, %v951_v17 }
 0x2ab   :  { %v950_v42 = vmul.f32 0.01, %v838_v63  ;;  %v981_v22 = vmax.f32 %v835_v13, %v949_v20 }
 0x2ac   :  { %v984_v21 = vmax.f32 %v846_v18, %v952_v48 }
 0x2ad   :  { %v982_v23 = vmax.f32 %v838_v63, %v950_v42  ;;  %v1896_v24 = vpop.f32.mrb[24].mxu0 }
 0x2ae   :  { %v859_v25 = vadd.f32 %v1896_v24, %v2442_v55  ;;  %v850_v26 = vpop.f32.mrb[25].mxu0  ;;  %v1012_v28 = vpack.c.bf16 %v984_v21, %v983_v15 }
 0x2af   :  { %v851_v29 = vadd.f32 %v2442_v55, %v850_v26  ;;  %v1897_v30 = vpop.f32.mrb[26].mxu0  ;;  %v1011_v31 = vpack.c.bf16 %v982_v23, %v981_v22 }
 0x2b0   :  { %v955_v32 = vmul.f32 0.01, %v859_v25  ;;  %v862_v33 = vadd.f32 %v1897_v30, %v2442_v55  ;;  %v853_v34 = vpop.f32.mrb[27].mxu0 }
 0x2b1   :  { %v953_v35 = vmul.f32 0.01, %v851_v29  ;;  %v854_v36 = vadd.f32 %v2442_v55, %v853_v34  ;;  %1938 = vmatprep.mubr.bf16.mxu1 %v1011_v31 }
 0x2b2   :  { %v956_v37 = vmul.f32 0.01, %v862_v33  ;;  %1939 = vmatmul.mubr.bf16.gmra.mrb[52].mxu1 %v1012_v28  ;;  %v987_v39 = vmax.f32 %v859_v25, %v955_v32 }
 0x2b3   :  { %v954_v38 = vmul.f32 0.01, %v854_v36  ;;  %v985_v41 = vmax.f32 %v851_v29, %v953_v35 }
 0x2b4   :  { %v988_v40 = vmax.f32 %v862_v33, %v956_v37 }
 0x2b5   :  { %v986_v43 = vmax.f32 %v854_v36, %v954_v38  ;;  %v1900_v44 = vpop.f32.mrb[28].mxu0 }
 0x2b6   :  { %v875_v45 = vadd.f32 %v1900_v44, %v2442_v55  ;;  %v866_v46 = vpop.f32.mrb[29].mxu0  ;;  %v1014_v47 = vpack.c.bf16 %v988_v40, %v987_v39 }
 0x2b7   :  { %v867_v27 = vadd.f32 %v2442_v55, %v866_v46  ;;  %v1901_v49 = vpop.f32.mrb[30].mxu0  ;;  %v1013_v50 = vpack.c.bf16 %v986_v43, %v985_v41 }
 0x2b8   :  { %v959_v51 = vmul.f32 0.01, %v875_v45  ;;  %v878_v52 = vadd.f32 %v1901_v49, %v2442_v55  ;;  %v869_v53 = vpop.f32.mrb[31].mxu0 }
 0x2b9   :  { %v957_v54 = vmul.f32 0.01, %v867_v27  ;;  %v870_v56 = vadd.f32 %v2442_v55, %v869_v53  ;;  %1942 = vmatprep.mubr.bf16.mxu1 %v1013_v50 }
 0x2ba   :  { %v960_v57 = vmul.f32 0.01, %v878_v52  ;;  %1943 = vmatmul.mubr.bf16.gmra.mrb[56].mxu1 %v1014_v47  ;;  %v991_v59 = vmax.f32 %v875_v45, %v959_v51 }
 0x2bb   :  { %v958_v58 = vmul.f32 0.01, %v870_v56  ;;  %v989_v61 = vmax.f32 %v867_v27, %v957_v54 }
 0x2bc   :  { %v992_v60 = vmax.f32 %v878_v52, %v960_v57 }
 0x2bd   :  { %v990_v62 = vmax.f32 %v870_v56, %v958_v58  ;;  %v1904_v0 = vpop.f32.mrb[32].mxu0 }
 0x2be   :  { %v891_v1 = vadd.f32 %v1904_v0, %v2442_v55  ;;  %v882_v2 = vpop.f32.mrb[33].mxu0  ;;  %v1016_v3 = vpack.c.bf16 %v992_v60, %v991_v59 }
 0x2bf   :  { %v883_v4 = vadd.f32 %v2442_v55, %v882_v2  ;;  %v1905_v5 = vpop.f32.mrb[34].mxu0  ;;  %v1015_v6 = vpack.c.bf16 %v990_v62, %v989_v61 }
 0x2c0   :  { %v963_v7 = vmul.f32 0.01, %v891_v1  ;;  %v894_v8 = vadd.f32 %v1905_v5, %v2442_v55  ;;  %v885_v9 = vpop.f32.mrb[35].mxu0 }
 0x2c1   :  { %v961_v10 = vmul.f32 0.01, %v883_v4  ;;  %v886_v11 = vadd.f32 %v2442_v55, %v885_v9  ;;  %1946 = vmatprep.mubr.bf16.mxu1 %v1015_v6 }
 0x2c2   :  { %v964_v12 = vmul.f32 0.01, %v894_v8  ;;  %1947 = vmatmul.mubr.bf16.gmra.mrb[60].mxu1 %v1016_v3  ;;  %v995_v14 = vmax.f32 %v891_v1, %v963_v7 }
 0x2c3   :  { %v962_v13 = vmul.f32 0.01, %v886_v11  ;;  %v993_v17 = vmax.f32 %v883_v4, %v961_v10 }
 0x2c4   :  { %v996_v16 = vmax.f32 %v894_v8, %v964_v12 }
 0x2c5   :  { %v994_v18 = vmax.f32 %v886_v11, %v962_v13  ;;  %v1908_v19 = vpop.f32.mrb[36].mxu0  ;;  %v2054_v11 = vld [vmem:[%s2570_s5 + $0x38] sm:$0xff]  }
 0x2c6   :  { %v907_v20 = vadd.f32 %v1908_v19, %v2442_v55  ;;  %v898_v63 = vpop.f32.mrb[37].mxu0  ;;  %v1018_v48 = vpack.c.bf16 %v996_v16, %v995_v14  ;;  %1980 = vmatprep.subr.bf16.mxu0 %v2054_v11 }
 0x2c7   :  { %v899_v42 = vadd.f32 %v2442_v55, %v898_v63  ;;  %v1909_v15 = vpop.f32.mrb[38].mxu0  ;;  %v1017_v21 = vpack.c.bf16 %v994_v18, %v993_v17  ;;  %1981 = vmatpush3.bf16.msra.mxu0 %v2054_v11 }
 0x2c8   :  { %v967_v22 = vmul.f32 0.01, %v907_v20  ;;  %v910_v23 = vadd.f32 %v1909_v15, %v2442_v55  ;;  %v901_v24 = vpop.f32.mrb[39].mxu0 }
 0x2c9   :  { %v965_v25 = vmul.f32 0.01, %v899_v42  ;;  %v902_v26 = vadd.f32 %v2442_v55, %v901_v24  ;;  %1950 = vmatprep.mubr.bf16.mxu1 %v1017_v21 }
 0x2ca   :  { %v968_v28 = vmul.f32 0.01, %v910_v23  ;;  %1951 = vmatmul.mubr.bf16.gmra.mrb[64].mxu1 %v1018_v48  ;;  %v999_v30 = vmax.f32 %v907_v20, %v967_v22 }
 0x2cb   :  { %v966_v29 = vmul.f32 0.01, %v902_v26  ;;  %v997_v32 = vmax.f32 %v899_v42, %v965_v25 }
 0x2cc   :  { %v1000_v31 = vmax.f32 %v910_v23, %v968_v28 }
 0x2cd   :  { %v998_v33 = vmax.f32 %v902_v26, %v966_v29  ;;  %v1912_v34 = vpop.f32.mrb[40].mxu0 }
 0x2ce   :  { %v923_v35 = vadd.f32 %v1912_v34, %v2442_v55  ;;  %v914_v36 = vpop.f32.mrb[41].mxu0  ;;  %v1020_v37 = vpack.c.bf16 %v1000_v31, %v999_v30 }
 0x2cf   :  { %v915_v38 = vadd.f32 %v2442_v55, %v914_v36  ;;  %v1913_v39 = vpop.f32.mrb[42].mxu0  ;;  %v1019_v40 = vpack.c.bf16 %v998_v33, %v997_v32 }
 0x2d0   :  { %v971_v41 = vmul.f32 0.01, %v923_v35  ;;  %v926_v43 = vadd.f32 %v1913_v39, %v2442_v55  ;;  %v917_v44 = vpop.f32.mrb[43].mxu0 }
 0x2d1   :  { %v969_v45 = vmul.f32 0.01, %v915_v38  ;;  %v918_v46 = vadd.f32 %v2442_v55, %v917_v44  ;;  %1954 = vmatprep.mubr.bf16.mxu1 %v1019_v40 }
 0x2d2   :  { %v972_v47 = vmul.f32 0.01, %v926_v43  ;;  %1955 = vmatmul.mubr.bf16.gmra.mrb[68].mxu1 %v1020_v37  ;;  %v1003_v49 = vmax.f32 %v923_v35, %v971_v41 }
 0x2d3   :  { %v970_v27 = vmul.f32 0.01, %v918_v46  ;;  %v1001_v51 = vmax.f32 %v915_v38, %v969_v45 }
 0x2d4   :  { %v1004_v50 = vmax.f32 %v926_v43, %v972_v47 }
 0x2d5   :  { %v1002_v52 = vmax.f32 %v918_v46, %v970_v27  ;;  %v1916_v53 = vpop.f32.mrb[44].mxu0 }
 0x2d6   :  { %v939_v54 = vadd.f32 %v1916_v53, %v2442_v55  ;;  %v930_v56 = vpop.f32.mrb[45].mxu0  ;;  %v1022_v57 = vpack.c.bf16 %v1004_v50, %v1003_v49 }
 0x2d7   :  { %v931_v58 = vadd.f32 %v2442_v55, %v930_v56  ;;  %v1917_v59 = vpop.f32.mrb[46].mxu0  ;;  %v1021_v60 = vpack.c.bf16 %v1002_v52, %v1001_v51 }
 0x2d8   :  { %v975_v61 = vmul.f32 0.01, %v939_v54  ;;  %v942_v62 = vadd.f32 %v1917_v59, %v2442_v55  ;;  %v933_v0 = vpop.f32.mrb[47].mxu0 }
 0x2d9   :  { %v973_v1 = vmul.f32 0.01, %v931_v58  ;;  %v934_v2 = vadd.f32 %v2442_v55, %v933_v0  ;;  %1958 = vmatprep.mubr.bf16.mxu1 %v1021_v60  ;;  %v2482_v55 = vld [vmem:[%s2574_s9] ss:$0 sm:$0xff] }
 0x2da   :  { %v976_v3 = vmul.f32 0.01, %v942_v62  ;;  %1959 = vmatmul.mubr.bf16.gmra.mrb[72].mxu1 %v1022_v57  ;;  %v1007_v5 = vmax.f32 %v939_v54, %v975_v61 }
 0x2db   :  { %v974_v4 = vmul.f32 0.01, %v934_v2  ;;  %v1005_v7 = vmax.f32 %v931_v58, %v973_v1 }
 0x2dc   :  { %v1008_v6 = vmax.f32 %v942_v62, %v976_v3 }
 0x2dd   :  { %v1006_v8 = vmax.f32 %v934_v2, %v974_v4 }
 0x2de   :  { %v1024_v9 = vpack.c.bf16 %v1008_v6, %v1007_v5 }
 0x2df   :  { %v1023_v10 = vpack.c.bf16 %v1006_v8, %v1005_v7 }
 0x2e1   :  { %1962 = vmatprep.mubr.bf16.mxu1 %v1023_v10 }
 0x2e2   :  { %1963 = vmatmul.mubr.bf16.gmra.mrb[76].mxu1 %v1024_v9 }
 0x37d   :  { %v1936_v12 = vpop.f32.mrb[48].mxu1 }
 0x37e   :  { %v1139_v13 = vadd.f32 %v1936_v12, %v2482_v55  ;;  %v1130_v14 = vpop.f32.mrb[49].mxu1 }
 0x37f   :  { %v1131_v16 = vadd.f32 %v2482_v55, %v1130_v14  ;;  %v1937_v17 = vpop.f32.mrb[50].mxu1 }
 0x380   :  { %v1259_v18 = vmul.f32 0.01, %v1139_v13  ;;  %v1142_v19 = vadd.f32 %v1937_v17, %v2482_v55  ;;  %v1133_v20 = vpop.f32.mrb[51].mxu1 }
 0x381   :  { %v1257_v63 = vmul.f32 0.01, %v1131_v16  ;;  %v1134_v48 = vadd.f32 %v2482_v55, %v1133_v20 }
 0x382   :  { %v1260_v42 = vmul.f32 0.01, %v1142_v19  ;;  %v1291_v21 = vmax.f32 %v1139_v13, %v1259_v18 }
 0x383   :  { %v1258_v15 = vmul.f32 0.01, %v1134_v48  ;;  %v1289_v23 = vmax.f32 %v1131_v16, %v1257_v63 }
 0x384   :  { %v1292_v22 = vmax.f32 %v1142_v19, %v1260_v42 }
 0x385   :  { %v1290_v24 = vmax.f32 %v1134_v48, %v1258_v15  ;;  %v1940_v25 = vpop.f32.mrb[52].mxu1 }
 0x386   :  { %v1322_v26 = vpack.c.bf16 %v1292_v22, %v1291_v21  ;;  %v1155_v28 = vadd.f32 %v1940_v25, %v2482_v55  ;;  %v1146_v29 = vpop.f32.mrb[53].mxu1 }
 0x387   :  { %v1147_v30 = vadd.f32 %v2482_v55, %v1146_v29  ;;  %v1941_v31 = vpop.f32.mrb[54].mxu1  ;;  %v1321_v32 = vpack.c.bf16 %v1290_v24, %v1289_v23 }
 0x388   :  { %v1263_v33 = vmul.f32 0.01, %v1155_v28  ;;  %v1158_v34 = vadd.f32 %v1941_v31, %v2482_v55  ;;  %v1149_v35 = vpop.f32.mrb[55].mxu1 }
 0x389   :  { %v1261_v36 = vmul.f32 0.01, %v1147_v30  ;;  %v1150_v37 = vadd.f32 %v2482_v55, %v1149_v35  ;;  %1982 = vmatprep.mubr.bf16.mxu0 %v1321_v32 }
 0x38a   :  { %v1264_v38 = vmul.f32 0.01, %v1158_v34  ;;  %1983 = vmatmul.mubr.bf16.vlgmr.msra.gmra.mrb[48].mxu0 %v1322_v26  ;;  %v1295_v40 = vmax.f32 %v1155_v28, %v1263_v33 }
 0x38b   :  { %v1262_v39 = vmul.f32 0.01, %v1150_v37  ;;  %v1293_v43 = vmax.f32 %v1147_v30, %v1261_v36 }
 0x38c   :  { %v1296_v41 = vmax.f32 %v1158_v34, %v1264_v38 }
 0x38d   :  { %v1294_v44 = vmax.f32 %v1150_v37, %v1262_v39  ;;  %v1944_v45 = vpop.f32.mrb[56].mxu1 }
 0x38e   :  { %v1171_v46 = vadd.f32 %v1944_v45, %v2482_v55  ;;  %v1162_v47 = vpop.f32.mrb[57].mxu1  ;;  %v1324_v27 = vpack.c.bf16 %v1296_v41, %v1295_v40 }
 0x38f   :  { %v1163_v49 = vadd.f32 %v2482_v55, %v1162_v47  ;;  %v1945_v50 = vpop.f32.mrb[58].mxu1  ;;  %v1323_v51 = vpack.c.bf16 %v1294_v44, %v1293_v43 }
 0x390   :  { %v1267_v52 = vmul.f32 0.01, %v1171_v46  ;;  %v1174_v53 = vadd.f32 %v1945_v50, %v2482_v55  ;;  %v1165_v54 = vpop.f32.mrb[59].mxu1 }
 0x391   :  { %v1265_v56 = vmul.f32 0.01, %v1163_v49  ;;  %v1166_v57 = vadd.f32 %v2482_v55, %v1165_v54  ;;  %1986 = vmatprep.mubr.bf16.mxu0 %v1323_v51 }
 0x392   :  { %v1268_v58 = vmul.f32 0.01, %v1174_v53  ;;  %1987 = vmatmul.mubr.bf16.gmra.mrb[52].mxu0 %v1324_v27  ;;  %v1299_v60 = vmax.f32 %v1171_v46, %v1267_v52 }
 0x393   :  { %v1266_v59 = vmul.f32 0.01, %v1166_v57  ;;  %v1297_v62 = vmax.f32 %v1163_v49, %v1265_v56 }
 0x394   :  { %v1300_v61 = vmax.f32 %v1174_v53, %v1268_v58 }
 0x395   :  { %v1298_v0 = vmax.f32 %v1166_v57, %v1266_v59  ;;  %v1948_v1 = vpop.f32.mrb[60].mxu1 }
 0x396   :  { %v1187_v2 = vadd.f32 %v1948_v1, %v2482_v55  ;;  %v1178_v3 = vpop.f32.mrb[61].mxu1  ;;  %v1326_v4 = vpack.c.bf16 %v1300_v61, %v1299_v60 }
 0x397   :  { %v1179_v5 = vadd.f32 %v2482_v55, %v1178_v3  ;;  %v1949_v6 = vpop.f32.mrb[62].mxu1  ;;  %v1325_v7 = vpack.c.bf16 %v1298_v0, %v1297_v62 }
 0x398   :  { %v1271_v8 = vmul.f32 0.01, %v1187_v2  ;;  %v1190_v9 = vadd.f32 %v1949_v6, %v2482_v55  ;;  %v1181_v10 = vpop.f32.mrb[63].mxu1 }
 0x399   :  { %v1269_v11 = vmul.f32 0.01, %v1179_v5  ;;  %v1182_v12 = vadd.f32 %v2482_v55, %v1181_v10  ;;  %1990 = vmatprep.mubr.bf16.mxu0 %v1325_v7 }
 0x39a   :  { %v1272_v13 = vmul.f32 0.01, %v1190_v9  ;;  %1991 = vmatmul.mubr.bf16.gmra.mrb[56].mxu0 %v1326_v4  ;;  %v1303_v16 = vmax.f32 %v1187_v2, %v1271_v8 }
 0x39b   :  { %v1270_v14 = vmul.f32 0.01, %v1182_v12  ;;  %v1301_v18 = vmax.f32 %v1179_v5, %v1269_v11 }
 0x39c   :  { %v1304_v17 = vmax.f32 %v1190_v9, %v1272_v13 }
 0x39d   :  { %v1302_v19 = vmax.f32 %v1182_v12, %v1270_v14  ;;  %v1952_v20 = vpop.f32.mrb[64].mxu1 }
 0x39e   :  { %v1203_v63 = vadd.f32 %v1952_v20, %v2482_v55  ;;  %v1194_v48 = vpop.f32.mrb[65].mxu1  ;;  %v1328_v42 = vpack.c.bf16 %v1304_v17, %v1303_v16 }
 0x39f   :  { %v1195_v15 = vadd.f32 %v2482_v55, %v1194_v48  ;;  %v1953_v21 = vpop.f32.mrb[66].mxu1  ;;  %v1327_v22 = vpack.c.bf16 %v1302_v19, %v1301_v18 }
 0x3a0   :  { %v1275_v23 = vmul.f32 0.01, %v1203_v63  ;;  %v1206_v24 = vadd.f32 %v1953_v21, %v2482_v55  ;;  %v1197_v25 = vpop.f32.mrb[67].mxu1 }
 0x3a1   :  { %v1273_v26 = vmul.f32 0.01, %v1195_v15  ;;  %v1198_v28 = vadd.f32 %v2482_v55, %v1197_v25  ;;  %1994 = vmatprep.mubr.bf16.mxu0 %v1327_v22 }
 0x3a2   :  { %v1276_v29 = vmul.f32 0.01, %v1206_v24  ;;  %1995 = vmatmul.mubr.bf16.gmra.mrb[60].mxu0 %v1328_v42  ;;  %v1307_v31 = vmax.f32 %v1203_v63, %v1275_v23 }
 0x3a3   :  { %v1274_v30 = vmul.f32 0.01, %v1198_v28  ;;  %v1305_v33 = vmax.f32 %v1195_v15, %v1273_v26 }
 0x3a4   :  { %v1308_v32 = vmax.f32 %v1206_v24, %v1276_v29 }
 0x3a5   :  { %v1306_v34 = vmax.f32 %v1198_v28, %v1274_v30  ;;  %v1956_v35 = vpop.f32.mrb[68].mxu1  ;;  %v2519_v28 = vld [vmem:[%s2575_s10] ss:$0 sm:$0xff]  ;;  %s2079_s10 = smov [#allocation2]  }
 0x3a6   :  { %v1219_v36 = vadd.f32 %v1956_v35, %v2482_v55  ;;  %v1210_v37 = vpop.f32.mrb[69].mxu1  ;;  %v1330_v38 = vpack.c.bf16 %v1308_v32, %v1307_v31  ;;  %s1606_s25 = sshll.u32 %s2079_s10, 4  ;;  %s1607_s25 = int_to_ptr.vmem [resolvable:$true] %s1606_s25 }
 0x3a7   :  { %v1211_v39 = vadd.f32 %v2482_v55, %v1210_v37  ;;  %v1957_v40 = vpop.f32.mrb[70].mxu1  ;;  %v1329_v41 = vpack.c.bf16 %v1306_v34, %v1305_v33  ;;  %s2055_s2 = scalar_lea.vmem %s1607_s25, 4096  ;;  %p2060_p1 = scmp.lt.s32.totalorder %s1607_s25, %s1607_s25 }
 0x3a8   :  { %v1279_v43 = vmul.f32 0.01, %v1219_v36  ;;  %v1222_v44 = vadd.f32 %v1957_v40, %v2482_v55  ;;  %v1213_v45 = vpop.f32.mrb[71].mxu1  ;;  %p2056_p0 = scmp.ne.s32.totalorder %s1607_s25, %s2055_s2  ;;  %p2061_p2 = scmp.lt.s32.totalorder %s2055_s2, %s2055_s2 }
 0x3a9   :  { %v1277_v46 = vmul.f32 0.01, %v1211_v39  ;;  %v1214_v47 = vadd.f32 %v2482_v55, %v1213_v45  ;;  %1998 = vmatprep.mubr.bf16.mxu0 %v1329_v41 }
 0x3aa   :  { %v1280_v27 = vmul.f32 0.01, %v1222_v44  ;;  %1999 = vmatmul.mubr.bf16.gmra.mrb[64].mxu0 %v1330_v38  ;;  %v1311_v50 = vmax.f32 %v1219_v36, %v1279_v43  ;;  %p2062_p3 = por %p2061_p2, %p2060_p1 }
 0x3ab   :  { %v1278_v49 = vmul.f32 0.01, %v1214_v47  ;;  %v1309_v52 = vmax.f32 %v1211_v39, %v1277_v46 }
 0x3ac   :  { %v1312_v51 = vmax.f32 %v1222_v44, %v1280_v27  ;;  %p2063_p4 = pnand %p2062_p3, %p2056_p0 }
 0x3ad   :  { %v1310_v53 = vmax.f32 %v1214_v47, %v1278_v49  ;;  %v1960_v54 = vpop.f32.mrb[72].mxu1 }
 0x3ae   :  { %v1235_v56 = vadd.f32 %v1960_v54, %v2482_v55  ;;  %v1226_v57 = vpop.f32.mrb[73].mxu1  ;;  %v1332_v58 = vpack.c.bf16 %v1312_v51, %v1311_v50 }
 0x3af   :  { %v1227_v59 = vadd.f32 %v2482_v55, %v1226_v57  ;;  %v1961_v60 = vpop.f32.mrb[74].mxu1  ;;  %v1331_v61 = vpack.c.bf16 %v1310_v53, %v1309_v52 }
 0x3b0   :  { %v1283_v62 = vmul.f32 0.01, %v1235_v56  ;;  %v1238_v0 = vadd.f32 %v1961_v60, %v2482_v55  ;;  %v1229_v1 = vpop.f32.mrb[75].mxu1 }
 0x3b1   :  { %v1281_v2 = vmul.f32 0.01, %v1227_v59  ;;  %v1230_v3 = vadd.f32 %v2482_v55, %v1229_v1  ;;  %2002 = vmatprep.mubr.bf16.mxu0 %v1331_v61 }
 0x3b2   :  { %v1284_v4 = vmul.f32 0.01, %v1238_v0  ;;  %2003 = vmatmul.mubr.bf16.gmra.mrb[68].mxu0 %v1332_v58  ;;  %v1315_v6 = vmax.f32 %v1235_v56, %v1283_v62 }
 0x3b3   :  { %v1282_v5 = vmul.f32 0.01, %v1230_v3  ;;  %v1313_v8 = vmax.f32 %v1227_v59, %v1281_v2 }
 0x3b4   :  { %v1316_v7 = vmax.f32 %v1238_v0, %v1284_v4 }
 0x3b5   :  { %v1314_v9 = vmax.f32 %v1230_v3, %v1282_v5  ;;  %v1964_v10 = vpop.f32.mrb[76].mxu1 }
 0x3b6   :  { %v1251_v11 = vadd.f32 %v1964_v10, %v2482_v55  ;;  %v1242_v12 = vpop.f32.mrb[77].mxu1  ;;  %v1334_v13 = vpack.c.bf16 %v1316_v7, %v1315_v6 }
 0x3b7   :  { %v1243_v14 = vadd.f32 %v2482_v55, %v1242_v12  ;;  %v1965_v16 = vpop.f32.mrb[78].mxu1  ;;  %v1333_v17 = vpack.c.bf16 %v1314_v9, %v1313_v8 }
 0x3b8   :  { %v1287_v18 = vmul.f32 0.01, %v1251_v11  ;;  %v1254_v19 = vadd.f32 %v1965_v16, %v2482_v55  ;;  %v1245_v20 = vpop.f32.mrb[79].mxu1 }
 0x3b9   :  { %v1285_v63 = vmul.f32 0.01, %v1243_v14  ;;  %v1246_v48 = vadd.f32 %v2482_v55, %v1245_v20  ;;  %2006 = vmatprep.mubr.bf16.mxu0 %v1333_v17 }
 0x3ba   :  { %v1288_v42 = vmul.f32 0.01, %v1254_v19  ;;  %2007 = vmatmul.mubr.bf16.gmra.mrb[72].mxu0 %v1334_v13  ;;  %v1319_v21 = vmax.f32 %v1251_v11, %v1287_v18 }
 0x3bb   :  { %v1286_v15 = vmul.f32 0.01, %v1246_v48  ;;  %v1317_v23 = vmax.f32 %v1243_v14, %v1285_v63 }
 0x3bc   :  { %v1320_v22 = vmax.f32 %v1254_v19, %v1288_v42 }
 0x3bd   :  { %v1318_v24 = vmax.f32 %v1246_v48, %v1286_v15 }
 0x3be   :  { %v1336_v25 = vpack.c.bf16 %v1320_v22, %v1319_v21 }
 0x3bf   :  { %v1335_v26 = vpack.c.bf16 %v1318_v24, %v1317_v23 }
 0x3c1   :  { %2010 = vmatprep.mubr.bf16.mxu0 %v1335_v26 }
 0x3c2   :  { %2011 = vmatmul.mubr.bf16.gmra.mrb[76].mxu0 %v1336_v25 }
 0x45d   :  { %v1984_v29 = vpop.f32.mrb[48].mxu0 }
 0x45e   :  { %v1451_v55 = vadd.f32 %v1984_v29, %v2519_v28  ;;  %v1442_v30 = vpop.f32.mrb[49].mxu0 }
 0x45f   :  { %v1443_v31 = vadd.f32 %v2519_v28, %v1442_v30  ;;  %v1985_v32 = vpop.f32.mrb[50].mxu0 }
 0x460   :  { %1571 = vst [vmem:[#allocation2 + $0x10] sm:$0xff] %v1451_v55  ;;  %v1454_v33 = vadd.f32 %v1985_v32, %v2519_v28  ;;  %v1445_v34 = vpop.f32.mrb[51].mxu0 }
 0x461   :  { %1569 = vst [vmem:[#allocation2] sm:$0xff] %v1443_v31  ;;  %v1446_v35 = vadd.f32 %v2519_v28, %v1445_v34 }
 0x462   :  { %1572 = vst [vmem:[#allocation2 + $0x18] sm:$0xff] %v1454_v33 }
 0x463   :  { %1570 = vst [vmem:[#allocation2 + $0x8] sm:$0xff] %v1446_v35 }
 0x465   :  { %v1988_v36 = vpop.f32.mrb[52].mxu0 }
 0x466   :  { %v1467_v37 = vadd.f32 %v1988_v36, %v2519_v28  ;;  %v1458_v38 = vpop.f32.mrb[53].mxu0 }
 0x467   :  { %v1459_v39 = vadd.f32 %v2519_v28, %v1458_v38  ;;  %v1989_v40 = vpop.f32.mrb[54].mxu0 }
 0x468   :  { %1575 = vst [vmem:[#allocation2 + $0x30] sm:$0xff] %v1467_v37  ;;  %v1470_v41 = vadd.f32 %v1989_v40, %v2519_v28  ;;  %v1461_v43 = vpop.f32.mrb[55].mxu0 }
 0x469   :  { %1573 = vst [vmem:[#allocation2 + $0x20] sm:$0xff] %v1459_v39  ;;  %v1462_v44 = vadd.f32 %v2519_v28, %v1461_v43 }
 0x46a   :  { %1576 = vst [vmem:[#allocation2 + $0x38] sm:$0xff] %v1470_v41 }
 0x46b   :  { %1574 = vst [vmem:[#allocation2 + $0x28] sm:$0xff] %v1462_v44 }
 0x46d   :  { %v1992_v45 = vpop.f32.mrb[56].mxu0 }
 0x46e   :  { %v1483_v46 = vadd.f32 %v1992_v45, %v2519_v28  ;;  %v1474_v47 = vpop.f32.mrb[57].mxu0 }
 0x46f   :  { %v1475_v27 = vadd.f32 %v2519_v28, %v1474_v47  ;;  %v1993_v49 = vpop.f32.mrb[58].mxu0 }
 0x470   :  { %1579 = vst [vmem:[#allocation2 + $0x50] sm:$0xff] %v1483_v46  ;;  %v1486_v50 = vadd.f32 %v1993_v49, %v2519_v28  ;;  %v1477_v51 = vpop.f32.mrb[59].mxu0 }
 0x471   :  { %1577 = vst [vmem:[#allocation2 + $0x40] sm:$0xff] %v1475_v27  ;;  %v1478_v52 = vadd.f32 %v2519_v28, %v1477_v51 }
 0x472   :  { %1580 = vst [vmem:[#allocation2 + $0x58] sm:$0xff] %v1486_v50 }
 0x473   :  { %1578 = vst [vmem:[#allocation2 + $0x48] sm:$0xff] %v1478_v52 }
 0x475   :  { %v1996_v53 = vpop.f32.mrb[60].mxu0 }
 0x476   :  { %v1499_v54 = vadd.f32 %v1996_v53, %v2519_v28  ;;  %v1490_v56 = vpop.f32.mrb[61].mxu0 }
 0x477   :  { %v1491_v57 = vadd.f32 %v2519_v28, %v1490_v56  ;;  %v1997_v58 = vpop.f32.mrb[62].mxu0 }
 0x478   :  { %1583 = vst [vmem:[#allocation2 + $0x70] sm:$0xff] %v1499_v54  ;;  %v1502_v59 = vadd.f32 %v1997_v58, %v2519_v28  ;;  %v1493_v60 = vpop.f32.mrb[63].mxu0 }
 0x479   :  { %1581 = vst [vmem:[#allocation2 + $0x60] sm:$0xff] %v1491_v57  ;;  %v1494_v61 = vadd.f32 %v2519_v28, %v1493_v60 }
 0x47a   :  { %1584 = vst [vmem:[#allocation2 + $0x78] sm:$0xff] %v1502_v59 }
 0x47b   :  { %1582 = vst [vmem:[#allocation2 + $0x68] sm:$0xff] %v1494_v61 }
 0x47d   :  { %v2000_v62 = vpop.f32.mrb[64].mxu0 }
 0x47e   :  { %v1515_v0 = vadd.f32 %v2000_v62, %v2519_v28  ;;  %v1506_v1 = vpop.f32.mrb[65].mxu0 }
 0x47f   :  { %v1507_v2 = vadd.f32 %v2519_v28, %v1506_v1  ;;  %v2001_v3 = vpop.f32.mrb[66].mxu0 }
 0x480   :  { %1587 = vst [vmem:[#allocation2 + $0x90] sm:$0xff] %v1515_v0  ;;  %v1518_v4 = vadd.f32 %v2001_v3, %v2519_v28  ;;  %v1509_v5 = vpop.f32.mrb[67].mxu0 }
 0x481   :  { %1585 = vst [vmem:[#allocation2 + $0x80] sm:$0xff] %v1507_v2  ;;  %v1510_v6 = vadd.f32 %v2519_v28, %v1509_v5 }
 0x482   :  { %1588 = vst [vmem:[#allocation2 + $0x98] sm:$0xff] %v1518_v4 }
 0x483   :  { %1586 = vst [vmem:[#allocation2 + $0x88] sm:$0xff] %v1510_v6 }
 0x485   :  { %v2004_v7 = vpop.f32.mrb[68].mxu0 }
 0x486   :  { %v1531_v8 = vadd.f32 %v2004_v7, %v2519_v28  ;;  %v1522_v9 = vpop.f32.mrb[69].mxu0 }
 0x487   :  { %v1523_v10 = vadd.f32 %v2519_v28, %v1522_v9  ;;  %v2005_v11 = vpop.f32.mrb[70].mxu0 }
 0x488   :  { %1591 = vst [vmem:[#allocation2 + $0xb0] sm:$0xff] %v1531_v8  ;;  %v1534_v12 = vadd.f32 %v2005_v11, %v2519_v28  ;;  %v1525_v13 = vpop.f32.mrb[71].mxu0 }
 0x489   :  { %1589 = vst [vmem:[#allocation2 + $0xa0] sm:$0xff] %v1523_v10  ;;  %v1526_v14 = vadd.f32 %v2519_v28, %v1525_v13 }
 0x48a   :  { %1592 = vst [vmem:[#allocation2 + $0xb8] sm:$0xff] %v1534_v12 }
 0x48b   :  { %1590 = vst [vmem:[#allocation2 + $0xa8] sm:$0xff] %v1526_v14 }
 0x48d   :  { %v2008_v16 = vpop.f32.mrb[72].mxu0 }
 0x48e   :  { %v1547_v17 = vadd.f32 %v2008_v16, %v2519_v28  ;;  %v1538_v18 = vpop.f32.mrb[73].mxu0 }
 0x48f   :  { %v1539_v19 = vadd.f32 %v2519_v28, %v1538_v18  ;;  %v2009_v20 = vpop.f32.mrb[74].mxu0 }
 0x490   :  { %1595 = vst [vmem:[#allocation2 + $0xd0] sm:$0xff] %v1547_v17  ;;  %v1550_v63 = vadd.f32 %v2009_v20, %v2519_v28  ;;  %v1541_v48 = vpop.f32.mrb[75].mxu0 }
 0x491   :  { %1593 = vst [vmem:[#allocation2 + $0xc0] sm:$0xff] %v1539_v19  ;;  %v1542_v42 = vadd.f32 %v2519_v28, %v1541_v48 }
 0x492   :  { %1596 = vst [vmem:[#allocation2 + $0xd8] sm:$0xff] %v1550_v63 }
 0x493   :  { %1594 = vst [vmem:[#allocation2 + $0xc8] sm:$0xff] %v1542_v42 }
 0x495   :  { %v2012_v15 = vpop.f32.mrb[76].mxu0 }
 0x496   :  { %v1563_v21 = vadd.f32 %v2012_v15, %v2519_v28  ;;  %v1554_v22 = vpop.f32.mrb[77].mxu0 }
 0x497   :  { %v1555_v23 = vadd.f32 %v2519_v28, %v1554_v22  ;;  %v2013_v24 = vpop.f32.mrb[78].mxu0 }
 0x498   :  { %1599 = vst [vmem:[#allocation2 + $0xf0] sm:$0xff] %v1563_v21  ;;  %v1566_v25 = vadd.f32 %v2013_v24, %v2519_v28  ;;  %v1557_v26 = vpop.f32.mrb[79].mxu0 }
 0x499   :  { %1597 = vst [vmem:[#allocation2 + $0xe0] sm:$0xff] %v1555_v23  ;;  %v1558_v29 = vadd.f32 %v2519_v28, %v1557_v26 }
 0x49a   :  { %1600 = vst [vmem:[#allocation2 + $0xf8] sm:$0xff] %v1566_v25 }
 0x49b   :  { %1598 = vst [vmem:[#allocation2 + $0xe8] sm:$0xff] %v1558_v29 }
 0x49c   :  { %2066 = shalt.err (!%p2063_p4)
}
 0x49d   :  { %s2067_s28 = scalar_lea.hbm %s2576_s11, 4096 }
 0x49e   :  { %p2068_p5 = scmp.ne.s32.totalorder %s2576_s11, %s2067_s28  ;;  %p2071_p6 = scmp.lt.u32.totalorder %s2067_s28, %s2576_s11 }
 0x4a0   :  { %p2073_p7 = pnand %p2071_p6, %p2068_p5 }
 0x4a2   :  { %2076 = shalt.err (!%p2073_p7)
}
 0x4a3   :  { %s2080_s30 = smov 128   ;;  %s2081_s12 = smov 8  }
 0x4a4   :  { %1612 = dma.vmem_to_hbm [thread:$0]  %s1607_s25, 4096, %s2576_s11, [#allocation3], %s2080_s30, %s2080_s30, %s2081_s12  }
 0x4a5   :  { %2077 = dma.done.wait [#allocation3], 4096  }
 0x4a6   :  { %2078 = vsyncadd [#allocation3], 4294963200 }
 0x4a7   :  { %1616 = vsyncpa [#allocation3], 1 }

</bundles_post_ra>
